<compile_context>
chip_gen: v5e
topology: v5e:2x2
jax: 0.10.0
libtpu: 0.0.40
codegen_flags: <defaults>
</compile_context>

<pallas_src>
import jax
import jax.numpy as jnp
from jax import lax
from jax.experimental import pallas as pl
from jax.experimental.pallas import tpu as pltpu


# ---------------------------------------------------------------------------
# Kernel
# ---------------------------------------------------------------------------
def vqa_head_kernel(q_ref, v_ref,
                    wi_ref, bix_ref, wh_ref, bhn_ref,
                    wq_ref, bq_ref, wv_ref, bv_ref,
                    w1_ref, b1_ref, w2_ref, b2_ref,
                    out_ref, xproj_ref):
    # Static shapes.
    Bp = v_ref.shape[0]                  # padded batch (multiple of 8)
    T = q_ref.shape[0] // Bp             # sequence length
    Hp = wh_ref.shape[0]                 # padded hidden (multiple of 128)

    # ---- (1) Hoisted GRU input projection: ONE big MXU matmul, biases folded in. ----
    # x_proj[:, 0:H]  = x @ W_ir + (b_ir + b_hr)
    # x_proj[:, H:2H] = x @ W_iz + (b_iz + b_hz)
    # x_proj[:, 2H:]  = x @ W_in +  b_in
    xproj_ref[...] = (
        jnp.dot(q_ref[...], wi_ref[...], preferred_element_type=jnp.float32)
        + bix_ref[...])

    # ---- (2) Independent v-branch hoisted before the recurrence (fills MXU slack). ----
    v_repr = jnp.maximum(
        jnp.dot(v_ref[...], wv_ref[...], preferred_element_type=jnp.float32)
        + bv_ref[...], 0.0)

    # Loop-invariant loads / broadcasts hoisted out of the recurrence.
    w_h = wh_ref[...]                                          # (Hp, 3Hp) bf16
    b_hn = jnp.broadcast_to(bhn_ref[...], (Bp, Hp))            # (Bp, Hp)  f32

    # ---- (3) GRU recurrence: one fused hidden matmul per step, fully unrolled. ----
    def gru_step(t, h):
        row = pl.multiple_of(t * Bp, Bp)
        xp = xproj_ref[pl.ds(row, Bp), :]                      # (Bp, 3Hp), biases pre-added
        hp = jnp.dot(h.astype(jnp.bfloat16), w_h,
                     preferred_element_type=jnp.float32)       # (Bp, 3Hp), one MXU push
        r = jax.nn.sigmoid(xp[:, :Hp] + hp[:, :Hp])
        z = jax.nn.sigmoid(xp[:, Hp:2 * Hp] + hp[:, Hp:2 * Hp])
        n = jnp.tanh(xp[:, 2 * Hp:] + r * (hp[:, 2 * Hp:] + b_hn))
        return (1.0 - z) * n + z * h

    h0 = jnp.zeros((Bp, Hp), jnp.float32)
    h_last = lax.fori_loop(0, T, gru_step, h0, unroll=True)    # output[:, -1] of the GRU

    # ---- (4) q_net (weight-norm Linear + ReLU, norm folded), joint, classifier. ----
    q_repr = jnp.maximum(
        jnp.dot(h_last.astype(jnp.bfloat16), wq_ref[...],
                preferred_element_type=jnp.float32) + bq_ref[...], 0.0)

    joint = q_repr * v_repr

    hid = jnp.maximum(
        jnp.dot(joint.astype(jnp.bfloat16), w1_ref[...],
                preferred_element_type=jnp.float32) + b1_ref[...], 0.0)

    # dropout is identity at inference.
    out_ref[...] = (
        jnp.dot(hid.astype(jnp.bfloat16), w2_ref[...],
                preferred_element_type=jnp.float32) + b2_ref[...])


# ---------------------------------------------------------------------------
# Wrapper: padding, gate fusion, bias folding, bf16 packing, pallas_call.
# ---------------------------------------------------------------------------
def _round_up(n, m):
    return ((n + m - 1) // m) * m


def _pad2(x, rows, cols):
    r, c = x.shape
    return jnp.pad(x, ((0, rows - r), (0, cols - c)))


def _prepare_inputs(q_tbd, v_bd, p):
    T, B, Dq = q_tbd.shape
    Dv = v_bd.shape[1]
    H = p["whh"].shape[2]
    C = p["w2"].shape[1]

    Bp = _round_up(B, 8)           # sublane tile
    Hp = _round_up(H, 128)         # lane tile
    Cp = _round_up(C, 128)
    Dqp = _round_up(Dq, 128)
    Dvp = _round_up(Dv, 128)

    wdt = jnp.bfloat16

    # GRU gate order [r, z, n] (PyTorch). Concatenate gates along the lane axis.
    wi = jnp.concatenate([_pad2(p["wih"][g], Dqp, Hp) for g in range(3)], axis=1).astype(wdt)
    wh = jnp.concatenate([_pad2(p["whh"][g], Hp, Hp) for g in range(3)], axis=1).astype(wdt)
    # Fold b_ih + b_hh for r/z into the hoisted input projection; keep b_hn separate
    # (it is scaled by the reset gate r).
    bix = jnp.concatenate([
        _pad2(p["bih"][0] + p["bhh"][0], 1, Hp),
        _pad2(p["bih"][1] + p["bhh"][1], 1, Hp),
        _pad2(p["bih"][2], 1, Hp)], axis=1).astype(jnp.float32)
    bhn = _pad2(p["bhh"][2], 1, Hp).astype(jnp.float32)

    wq = _pad2(p["wq"], Hp, Hp).astype(wdt)
    bq = _pad2(p["bq"], 1, Hp).astype(jnp.float32)
    wv = _pad2(p["wv"], Dvp, Hp).astype(wdt)
    bv = _pad2(p["bv"], 1, Hp).astype(jnp.float32)
    w1 = _pad2(p["w1"], Hp, 2 * Hp).astype(wdt)
    b1 = _pad2(p["b1"], 1, 2 * Hp).astype(jnp.float32)
    w2 = _pad2(p["w2"], 2 * Hp, Cp).astype(wdt)
    b2 = _pad2(p["b2"], 1, Cp).astype(jnp.float32)

    # q as a flat lane-dense slab: (T*Bp, Dqp); v padded to (Bp, Dvp).
    q_flat = jnp.pad(q_tbd, ((0, 0), (0, Bp - B), (0, Dqp - Dq))
                     ).reshape(T * Bp, Dqp).astype(wdt)
    v_pad = _pad2(v_bd, Bp, Dvp).astype(wdt)

    tensors = (q_flat, v_pad, wi, bix, wh, bhn, wq, bq, wv, bv, w1, b1, w2, b2)
    dims = dict(T=T, B=B, Bp=Bp, Hp=Hp, C=C, Cp=Cp)
    return tensors, dims


def inference_model_head(q_tbd, v_bd, params):
    """q_tbd: (T, B, q_dim) audio feature sequence (time-major); v_bd: (B, v_dim) image CLS."""
    tensors, d = _prepare_inputs(q_tbd, v_bd, params)
    T, B, Bp, Hp, C, Cp = d["T"], d["B"], d["Bp"], d["Hp"], d["C"], d["Cp"]

    vmem = pltpu.MemorySpace.VMEM
    out_padded = pl.pallas_call(
        vqa_head_kernel,
        out_shape=jax.ShapeDtypeStruct((Bp, Cp), jnp.float32),
        in_specs=[pl.BlockSpec(memory_space=vmem)] * len(tensors),
        out_specs=pl.BlockSpec(memory_space=vmem),
        scratch_shapes=[pltpu.VMEM((T * Bp, 3 * Hp), jnp.float32)],   # hoisted GRU input proj
        compiler_params=pltpu.CompilerParams(vmem_limit_bytes=32 * 1024 * 1024),
    )(*tensors)
    return out_padded[:B, :C]


# ---------------------------------------------------------------------------
# Pure-JAX reference (same math as the PyTorch module) for correctness check.
# ---------------------------------------------------------------------------
def reference_head(q_tbd, v_bd, p):
    T, B, _ = q_tbd.shape
    H = p["whh"].shape[2]
    h = jnp.zeros((B, H), jnp.float32)
    for t in range(T):
        x = q_tbd[t]
        r = jax.nn.sigmoid(x @ p["wih"][0] + p["bih"][0] + h @ p["whh"][0] + p["bhh"][0])
        z = jax.nn.sigmoid(x @ p["wih"][1] + p["bih"][1] + h @ p["whh"][1] + p["bhh"][1])
        n = jnp.tanh(x @ p["wih"][2] + p["bih"][2] + r * (h @ p["whh"][2] + p["bhh"][2]))
        h = (1.0 - z) * n + z * h
    q_repr = jnp.maximum(h @ p["wq"] + p["bq"], 0.0)
    v_repr = jnp.maximum(v_bd @ p["wv"] + p["bv"], 0.0)
    joint = q_repr * v_repr
    hid = jnp.maximum(joint @ p["w1"] + p["b1"], 0.0)
    return hid @ p["w2"] + p["b2"]


if __name__ == "__main__":
    # Small shapes consistent with the forward: q_dim=16 (speech feat dim), v_dim=32 (image feat
    # dim, stand-in for ViT-large 1024), num_hid=32, num_classes=16, batch=2, seq=8.
    B, T, Dq, Dv, H, C = 2, 8, 16, 32, 32, 16

    key = jax.random.PRNGKey(0)
    ks = jax.random.split(key, 16)

    def init(k, shape, scale=0.1):
        return jax.random.normal(k, shape, jnp.float32) * scale

    params = {
        "wih": init(ks[0], (3, Dq, H)),     # GRU input weights, gates [r, z, n]
        "whh": init(ks[1], (3, H, H)),      # GRU hidden weights
        "bih": init(ks[2], (3, 1, H)),
        "bhh": init(ks[3], (3, 1, H)),
        "wq": init(ks[4], (H, H)),          # q_net FCNet (weight norm folded)
        "bq": init(ks[5], (1, H)),
        "wv": init(ks[6], (Dv, H)),         # v_net FCNet
        "bv": init(ks[7], (1, H)),
        "w1": init(ks[8], (H, 2 * H)),      # classifier layer 1
        "b1": init(ks[9], (1, 2 * H)),
        "w2": init(ks[10], (2 * H, C)),     # classifier layer 2
        "b2": init(ks[11], (1, C)),
    }

    q = jax.random.normal(ks[12], (T, B, Dq), jnp.float32)   # audio feature sequence (time-major)
    v = jax.random.normal(ks[13], (B, Dv), jnp.float32)      # image CLS features

    logits = jax.block_until_ready(inference_model_head(q, v, params))

    # Reference evaluated with the same bf16-quantized weights/inputs the kernel consumes
    # (kernel stores weights in bf16 and feeds the MXU bf16 with f32 accumulation).
    def bq16(x):
        return x.astype(jnp.bfloat16).astype(jnp.float32)

    params_q = jax.tree_util.tree_map(bq16, params)
    ref = reference_head(bq16(q), bq16(v), params_q)

    assert logits.shape == (B, C)
    assert jnp.allclose(logits, ref, atol=1e-2, rtol=1e-2), "kernel mismatch vs reference"

    print("KERNEL_OK")
</pallas_src>

<mosaic_0001>
module attributes {stable_mosaic.version = 11 : i64} {
  func.func @vqa_head_kernel(%arg0: memref<64x128xbf16, #tpu.memory_space<vmem>>, %arg1: memref<8x128xbf16, #tpu.memory_space<vmem>>, %arg2: memref<128x384xbf16, #tpu.memory_space<vmem>>, %arg3: memref<1x384xf32, #tpu.memory_space<vmem>>, %arg4: memref<128x384xbf16, #tpu.memory_space<vmem>>, %arg5: memref<1x128xf32, #tpu.memory_space<vmem>>, %arg6: memref<128x128xbf16, #tpu.memory_space<vmem>>, %arg7: memref<1x128xf32, #tpu.memory_space<vmem>>, %arg8: memref<128x128xbf16, #tpu.memory_space<vmem>>, %arg9: memref<1x128xf32, #tpu.memory_space<vmem>>, %arg10: memref<128x256xbf16, #tpu.memory_space<vmem>>, %arg11: memref<1x256xf32, #tpu.memory_space<vmem>>, %arg12: memref<256x128xbf16, #tpu.memory_space<vmem>>, %arg13: memref<1x128xf32, #tpu.memory_space<vmem>>, %arg14: memref<8x128xf32, #tpu.memory_space<vmem>>, %arg15: memref<64x384xf32, #tpu.memory_space<vmem>>) attributes {dimension_semantics = [], scalar_prefetch = 0 : i64, scratch_operands = 1 : i64, tpu.core_type = #tpu.core_type<tc>} {
    %c0 = arith.constant 0 : index
    %c0_0 = arith.constant 0 : index
    %0 = vector.load %arg0[%c0, %c0_0] : memref<64x128xbf16, #tpu.memory_space<vmem>>, vector<64x128xbf16>
    %c0_1 = arith.constant 0 : index
    %c0_2 = arith.constant 0 : index
    %1 = vector.load %arg2[%c0_1, %c0_2] : memref<128x384xbf16, #tpu.memory_space<vmem>>, vector<128x384xbf16>
    %cst = arith.constant dense<0.000000e+00> : vector<64x384xf32>
    %2 = tpu.matmul %0, %1, %cst {dimension_numbers = #tpu.dot_dimension_numbers<[1], [0], [0], [1], [0, 0, 1, 1], [], []>} : vector<64x128xbf16>, vector<128x384xbf16>, vector<64x384xf32> -> vector<64x384xf32>
    %c0_3 = arith.constant 0 : index
    %c0_4 = arith.constant 0 : index
    %3 = vector.load %arg3[%c0_3, %c0_4] : memref<1x384xf32, #tpu.memory_space<vmem>>, vector<1x384xf32>
    %4 = vector.broadcast %3 : vector<1x384xf32> to vector<64x384xf32>
    %5 = arith.addf %2, %4 : vector<64x384xf32>
    %c0_5 = arith.constant 0 : index
    %c0_6 = arith.constant 0 : index
    %6 = vector.load %arg15[%c0_5, %c0_6] : memref<64x384xf32, #tpu.memory_space<vmem>>, vector<64x384xf32>
    tpu.vector_store %arg15[%c0_5, %c0_6], %5 {strides = array<i32>} : memref<64x384xf32, #tpu.memory_space<vmem>>, vector<64x384xf32>,
    %c0_7 = arith.constant 0 : index
    %c0_8 = arith.constant 0 : index
    %7 = vector.load %arg1[%c0_7, %c0_8] : memref<8x128xbf16, #tpu.memory_space<vmem>>, vector<8x128xbf16>
    %c0_9 = arith.constant 0 : index
    %c0_10 = arith.constant 0 : index
    %8 = vector.load %arg8[%c0_9, %c0_10] : memref<128x128xbf16, #tpu.memory_space<vmem>>, vector<128x128xbf16>
    %cst_11 = arith.constant dense<0.000000e+00> : vector<8x128xf32>
    %9 = tpu.matmul %7, %8, %cst_11 {dimension_numbers = #tpu.dot_dimension_numbers<[1], [0], [0], [1], [0, 0, 1, 1], [], []>} : vector<8x128xbf16>, vector<128x128xbf16>, vector<8x128xf32> -> vector<8x128xf32>
    %c0_12 = arith.constant 0 : index
    %c0_13 = arith.constant 0 : index
    %10 = vector.load %arg9[%c0_12, %c0_13] : memref<1x128xf32, #tpu.memory_space<vmem>>, vector<1x128xf32>
    %11 = vector.broadcast %10 : vector<1x128xf32> to vector<8x128xf32>
    %12 = arith.addf %9, %11 : vector<8x128xf32>
    %cst_14 = arith.constant 0.000000e+00 : f32
    %13 = vector.broadcast %cst_14 : f32 to vector<8x128xf32>
    %14 = arith.maximumf %12, %13 : vector<8x128xf32>
    %c0_15 = arith.constant 0 : index
    %c0_16 = arith.constant 0 : index
    %15 = vector.load %arg4[%c0_15, %c0_16] : memref<128x384xbf16, #tpu.memory_space<vmem>>, vector<128x384xbf16>
    %c0_17 = arith.constant 0 : index
    %c0_18 = arith.constant 0 : index
    %16 = vector.load %arg5[%c0_17, %c0_18] : memref<1x128xf32, #tpu.memory_space<vmem>>, vector<1x128xf32>
    %17 = vector.shape_cast %16 : vector<1x128xf32> to vector<1x128xf32>
    %18 = vector.broadcast %17 : vector<1x128xf32> to vector<8x128xf32>
    %cst_19 = arith.constant 0.000000e+00 : f32
    %19 = vector.broadcast %cst_19 : f32 to vector<8x128xf32>
    %c0_i32 = arith.constant 0 : i32
    %c8_i32 = arith.constant 8 : i32
    %20 = arith.muli %c0_i32, %c8_i32 : i32
    %21 = tpu.assume_multiple %20, 8 : i32
    %22 = arith.index_cast %21 : i32 to index
    %c0_20 = arith.constant 0 : index
    %23 = vector.load %arg15[%22, %c0_20] : memref<64x384xf32, #tpu.memory_space<vmem>>, vector<8x384xf32>
    %24 = arith.truncf %19 : vector<8x128xf32> to vector<8x128xbf16>
    %cst_21 = arith.constant dense<0.000000e+00> : vector<8x384xf32>
    %25 = tpu.matmul %24, %15, %cst_21 {dimension_numbers = #tpu.dot_dimension_numbers<[1], [0], [0], [1], [0, 0, 1, 1], [], []>} : vector<8x128xbf16>, vector<128x384xbf16>, vector<8x384xf32> -> vector<8x384xf32>
    %26 = vector.extract_strided_slice %23 {offsets = [0, 0], sizes = [8, 128], strides = [1, 1]} : vector<8x384xf32> to vector<8x128xf32>
    %27 = vector.extract_strided_slice %25 {offsets = [0, 0], sizes = [8, 128], strides = [1, 1]} : vector<8x384xf32> to vector<8x128xf32>
    %28 = arith.addf %26, %27 : vector<8x128xf32>
    %29 = arith.negf %28 : vector<8x128xf32>
    %30 = math.exp %29 : vector<8x128xf32>
    %cst_22 = arith.constant 1.000000e+00 : f32
    %31 = vector.broadcast %cst_22 : f32 to vector<8x128xf32>
    %32 = arith.addf %31, %30 : vector<8x128xf32>
    %33 = arith.divf %31, %32 : vector<8x128xf32>
    %34 = vector.extract_strided_slice %23 {offsets = [0, 128], sizes = [8, 128], strides = [1, 1]} : vector<8x384xf32> to vector<8x128xf32>
    %35 = vector.extract_strided_slice %25 {offsets = [0, 128], sizes = [8, 128], strides = [1, 1]} : vector<8x384xf32> to vector<8x128xf32>
    %36 = arith.addf %34, %35 : vector<8x128xf32>
    %37 = arith.negf %36 : vector<8x128xf32>
    %38 = math.exp %37 : vector<8x128xf32>
    %cst_23 = arith.constant 1.000000e+00 : f32
    %39 = vector.broadcast %cst_23 : f32 to vector<8x128xf32>
    %40 = arith.addf %39, %38 : vector<8x128xf32>
    %41 = arith.divf %39, %40 : vector<8x128xf32>
    %42 = vector.extract_strided_slice %23 {offsets = [0, 256], sizes = [8, 128], strides = [1, 1]} : vector<8x384xf32> to vector<8x128xf32>
    %43 = vector.extract_strided_slice %25 {offsets = [0, 256], sizes = [8, 128], strides = [1, 1]} : vector<8x384xf32> to vector<8x128xf32>
    %44 = arith.addf %43, %18 : vector<8x128xf32>
    %45 = arith.mulf %33, %44 : vector<8x128xf32>
    %46 = arith.addf %42, %45 : vector<8x128xf32>
    %47 = math.tanh %46 : vector<8x128xf32>
    %cst_24 = arith.constant 1.000000e+00 : f32
    %48 = vector.broadcast %cst_24 : f32 to vector<8x128xf32>
    %49 = arith.subf %48, %41 : vector<8x128xf32>
    %50 = arith.mulf %49, %47 : vector<8x128xf32>
    %51 = arith.mulf %41, %19 : vector<8x128xf32>
    %52 = arith.addf %50, %51 : vector<8x128xf32>
    %c1_i32 = arith.constant 1 : i32
    %c8_i32_25 = arith.constant 8 : i32
    %53 = arith.muli %c1_i32, %c8_i32_25 : i32
    %54 = tpu.assume_multiple %53, 8 : i32
    %55 = arith.index_cast %54 : i32 to index
    %c0_26 = arith.constant 0 : index
    %56 = vector.load %arg15[%55, %c0_26] : memref<64x384xf32, #tpu.memory_space<vmem>>, vector<8x384xf32>
    %57 = arith.truncf %52 : vector<8x128xf32> to vector<8x128xbf16>
    %cst_27 = arith.constant dense<0.000000e+00> : vector<8x384xf32>
    %58 = tpu.matmul %57, %15, %cst_27 {dimension_numbers = #tpu.dot_dimension_numbers<[1], [0], [0], [1], [0, 0, 1, 1], [], []>} : vector<8x128xbf16>, vector<128x384xbf16>, vector<8x384xf32> -> vector<8x384xf32>
    %59 = vector.extract_strided_slice %56 {offsets = [0, 0], sizes = [8, 128], strides = [1, 1]} : vector<8x384xf32> to vector<8x128xf32>
    %60 = vector.extract_strided_slice %58 {offsets = [0, 0], sizes = [8, 128], strides = [1, 1]} : vector<8x384xf32> to vector<8x128xf32>
    %61 = arith.addf %59, %60 : vector<8x128xf32>
    %62 = arith.negf %61 : vector<8x128xf32>
    %63 = math.exp %62 : vector<8x128xf32>
    %cst_28 = arith.constant 1.000000e+00 : f32
    %64 = vector.broadcast %cst_28 : f32 to vector<8x128xf32>
    %65 = arith.addf %64, %63 : vector<8x128xf32>
    %66 = arith.divf %64, %65 : vector<8x128xf32>
    %67 = vector.extract_strided_slice %56 {offsets = [0, 128], sizes = [8, 128], strides = [1, 1]} : vector<8x384xf32> to vector<8x128xf32>
    %68 = vector.extract_strided_slice %58 {offsets = [0, 128], sizes = [8, 128], strides = [1, 1]} : vector<8x384xf32> to vector<8x128xf32>
    %69 = arith.addf %67, %68 : vector<8x128xf32>
    %70 = arith.negf %69 : vector<8x128xf32>
    %71 = math.exp %70 : vector<8x128xf32>
    %cst_29 = arith.constant 1.000000e+00 : f32
    %72 = vector.broadcast %cst_29 : f32 to vector<8x128xf32>
    %73 = arith.addf %72, %71 : vector<8x128xf32>
    %74 = arith.divf %72, %73 : vector<8x128xf32>
    %75 = vector.extract_strided_slice %56 {offsets = [0, 256], sizes = [8, 128], strides = [1, 1]} : vector<8x384xf32> to vector<8x128xf32>
    %76 = vector.extract_strided_slice %58 {offsets = [0, 256], sizes = [8, 128], strides = [1, 1]} : vector<8x384xf32> to vector<8x128xf32>
    %77 = arith.addf %76, %18 : vector<8x128xf32>
    %78 = arith.mulf %66, %77 : vector<8x128xf32>
    %79 = arith.addf %75, %78 : vector<8x128xf32>
    %80 = math.tanh %79 : vector<8x128xf32>
    %cst_30 = arith.constant 1.000000e+00 : f32
    %81 = vector.broadcast %cst_30 : f32 to vector<8x128xf32>
    %82 = arith.subf %81, %74 : vector<8x128xf32>
    %83 = arith.mulf %82, %80 : vector<8x128xf32>
    %84 = arith.mulf %74, %52 : vector<8x128xf32>
    %85 = arith.addf %83, %84 : vector<8x128xf32>
    %c2_i32 = arith.constant 2 : i32
    %c8_i32_31 = arith.constant 8 : i32
    %86 = arith.muli %c2_i32, %c8_i32_31 : i32
    %87 = tpu.assume_multiple %86, 8 : i32
    %88 = arith.index_cast %87 : i32 to index
    %c0_32 = arith.constant 0 : index
    %89 = vector.load %arg15[%88, %c0_32] : memref<64x384xf32, #tpu.memory_space<vmem>>, vector<8x384xf32>
    %90 = arith.truncf %85 : vector<8x128xf32> to vector<8x128xbf16>
    %cst_33 = arith.constant dense<0.000000e+00> : vector<8x384xf32>
    %91 = tpu.matmul %90, %15, %cst_33 {dimension_numbers = #tpu.dot_dimension_numbers<[1], [0], [0], [1], [0, 0, 1, 1], [], []>} : vector<8x128xbf16>, vector<128x384xbf16>, vector<8x384xf32> -> vector<8x384xf32>
    %92 = vector.extract_strided_slice %89 {offsets = [0, 0], sizes = [8, 128], strides = [1, 1]} : vector<8x384xf32> to vector<8x128xf32>
    %93 = vector.extract_strided_slice %91 {offsets = [0, 0], sizes = [8, 128], strides = [1, 1]} : vector<8x384xf32> to vector<8x128xf32>
    %94 = arith.addf %92, %93 : vector<8x128xf32>
    %95 = arith.negf %94 : vector<8x128xf32>
    %96 = math.exp %95 : vector<8x128xf32>
    %cst_34 = arith.constant 1.000000e+00 : f32
    %97 = vector.broadcast %cst_34 : f32 to vector<8x128xf32>
    %98 = arith.addf %97, %96 : vector<8x128xf32>
    %99 = arith.divf %97, %98 : vector<8x128xf32>
    %100 = vector.extract_strided_slice %89 {offsets = [0, 128], sizes = [8, 128], strides = [1, 1]} : vector<8x384xf32> to vector<8x128xf32>
    %101 = vector.extract_strided_slice %91 {offsets = [0, 128], sizes = [8, 128], strides = [1, 1]} : vector<8x384xf32> to vector<8x128xf32>
    %102 = arith.addf %100, %101 : vector<8x128xf32>
    %103 = arith.negf %102 : vector<8x128xf32>
    %104 = math.exp %103 : vector<8x128xf32>
    %cst_35 = arith.constant 1.000000e+00 : f32
    %105 = vector.broadcast %cst_35 : f32 to vector<8x128xf32>
    %106 = arith.addf %105, %104 : vector<8x128xf32>
    %107 = arith.divf %105, %106 : vector<8x128xf32>
    %108 = vector.extract_strided_slice %89 {offsets = [0, 256], sizes = [8, 128], strides = [1, 1]} : vector<8x384xf32> to vector<8x128xf32>
    %109 = vector.extract_strided_slice %91 {offsets = [0, 256], sizes = [8, 128], strides = [1, 1]} : vector<8x384xf32> to vector<8x128xf32>
    %110 = arith.addf %109, %18 : vector<8x128xf32>
    %111 = arith.mulf %99, %110 : vector<8x128xf32>
    %112 = arith.addf %108, %111 : vector<8x128xf32>
    %113 = math.tanh %112 : vector<8x128xf32>
    %cst_36 = arith.constant 1.000000e+00 : f32
    %114 = vector.broadcast %cst_36 : f32 to vector<8x128xf32>
    %115 = arith.subf %114, %107 : vector<8x128xf32>
    %116 = arith.mulf %115, %113 : vector<8x128xf32>
    %117 = arith.mulf %107, %85 : vector<8x128xf32>
    %118 = arith.addf %116, %117 : vector<8x128xf32>
    %c3_i32 = arith.constant 3 : i32
    %c8_i32_37 = arith.constant 8 : i32
    %119 = arith.muli %c3_i32, %c8_i32_37 : i32
    %120 = tpu.assume_multiple %119, 8 : i32
    %121 = arith.index_cast %120 : i32 to index
    %c0_38 = arith.constant 0 : index
    %122 = vector.load %arg15[%121, %c0_38] : memref<64x384xf32, #tpu.memory_space<vmem>>, vector<8x384xf32>
    %123 = arith.truncf %118 : vector<8x128xf32> to vector<8x128xbf16>
    %cst_39 = arith.constant dense<0.000000e+00> : vector<8x384xf32>
    %124 = tpu.matmul %123, %15, %cst_39 {dimension_numbers = #tpu.dot_dimension_numbers<[1], [0], [0], [1], [0, 0, 1, 1], [], []>} : vector<8x128xbf16>, vector<128x384xbf16>, vector<8x384xf32> -> vector<8x384xf32>
    %125 = vector.extract_strided_slice %122 {offsets = [0, 0], sizes = [8, 128], strides = [1, 1]} : vector<8x384xf32> to vector<8x128xf32>
    %126 = vector.extract_strided_slice %124 {offsets = [0, 0], sizes = [8, 128], strides = [1, 1]} : vector<8x384xf32> to vector<8x128xf32>
    %127 = arith.addf %125, %126 : vector<8x128xf32>
    %128 = arith.negf %127 : vector<8x128xf32>
    %129 = math.exp %128 : vector<8x128xf32>
    %cst_40 = arith.constant 1.000000e+00 : f32
    %130 = vector.broadcast %cst_40 : f32 to vector<8x128xf32>
    %131 = arith.addf %130, %129 : vector<8x128xf32>
    %132 = arith.divf %130, %131 : vector<8x128xf32>
    %133 = vector.extract_strided_slice %122 {offsets = [0, 128], sizes = [8, 128], strides = [1, 1]} : vector<8x384xf32> to vector<8x128xf32>
    %134 = vector.extract_strided_slice %124 {offsets = [0, 128], sizes = [8, 128], strides = [1, 1]} : vector<8x384xf32> to vector<8x128xf32>
    %135 = arith.addf %133, %134 : vector<8x128xf32>
    %136 = arith.negf %135 : vector<8x128xf32>
    %137 = math.exp %136 : vector<8x128xf32>
    %cst_41 = arith.constant 1.000000e+00 : f32
    %138 = vector.broadcast %cst_41 : f32 to vector<8x128xf32>
    %139 = arith.addf %138, %137 : vector<8x128xf32>
    %140 = arith.divf %138, %139 : vector<8x128xf32>
    %141 = vector.extract_strided_slice %122 {offsets = [0, 256], sizes = [8, 128], strides = [1, 1]} : vector<8x384xf32> to vector<8x128xf32>
    %142 = vector.extract_strided_slice %124 {offsets = [0, 256], sizes = [8, 128], strides = [1, 1]} : vector<8x384xf32> to vector<8x128xf32>
    %143 = arith.addf %142, %18 : vector<8x128xf32>
    %144 = arith.mulf %132, %143 : vector<8x128xf32>
    %145 = arith.addf %141, %144 : vector<8x128xf32>
    %146 = math.tanh %145 : vector<8x128xf32>
    %cst_42 = arith.constant 1.000000e+00 : f32
    %147 = vector.broadcast %cst_42 : f32 to vector<8x128xf32>
    %148 = arith.subf %147, %140 : vector<8x128xf32>
    %149 = arith.mulf %148, %146 : vector<8x128xf32>
    %150 = arith.mulf %140, %118 : vector<8x128xf32>
    %151 = arith.addf %149, %150 : vector<8x128xf32>
    %c4_i32 = arith.constant 4 : i32
    %c8_i32_43 = arith.constant 8 : i32
    %152 = arith.muli %c4_i32, %c8_i32_43 : i32
    %153 = tpu.assume_multiple %152, 8 : i32
    %154 = arith.index_cast %153 : i32 to index
    %c0_44 = arith.constant 0 : index
    %155 = vector.load %arg15[%154, %c0_44] : memref<64x384xf32, #tpu.memory_space<vmem>>, vector<8x384xf32>
    %156 = arith.truncf %151 : vector<8x128xf32> to vector<8x128xbf16>
    %cst_45 = arith.constant dense<0.000000e+00> : vector<8x384xf32>
    %157 = tpu.matmul %156, %15, %cst_45 {dimension_numbers = #tpu.dot_dimension_numbers<[1], [0], [0], [1], [0, 0, 1, 1], [], []>} : vector<8x128xbf16>, vector<128x384xbf16>, vector<8x384xf32> -> vector<8x384xf32>
    %158 = vector.extract_strided_slice %155 {offsets = [0, 0], sizes = [8, 128], strides = [1, 1]} : vector<8x384xf32> to vector<8x128xf32>
    %159 = vector.extract_strided_slice %157 {offsets = [0, 0], sizes = [8, 128], strides = [1, 1]} : vector<8x384xf32> to vector<8x128xf32>
    %160 = arith.addf %158, %159 : vector<8x128xf32>
    %161 = arith.negf %160 : vector<8x128xf32>
    %162 = math.exp %161 : vector<8x128xf32>
    %cst_46 = arith.constant 1.000000e+00 : f32
    %163 = vector.broadcast %cst_46 : f32 to vector<8x128xf32>
    %164 = arith.addf %163, %162 : vector<8x128xf32>
    %165 = arith.divf %163, %164 : vector<8x128xf32>
    %166 = vector.extract_strided_slice %155 {offsets = [0, 128], sizes = [8, 128], strides = [1, 1]} : vector<8x384xf32> to vector<8x128xf32>
    %167 = vector.extract_strided_slice %157 {offsets = [0, 128], sizes = [8, 128], strides = [1, 1]} : vector<8x384xf32> to vector<8x128xf32>
    %168 = arith.addf %166, %167 : vector<8x128xf32>
    %169 = arith.negf %168 : vector<8x128xf32>
    %170 = math.exp %169 : vector<8x128xf32>
    %cst_47 = arith.constant 1.000000e+00 : f32
    %171 = vector.broadcast %cst_47 : f32 to vector<8x128xf32>
    %172 = arith.addf %171, %170 : vector<8x128xf32>
    %173 = arith.divf %171, %172 : vector<8x128xf32>
    %174 = vector.extract_strided_slice %155 {offsets = [0, 256], sizes = [8, 128], strides = [1, 1]} : vector<8x384xf32> to vector<8x128xf32>
    %175 = vector.extract_strided_slice %157 {offsets = [0, 256], sizes = [8, 128], strides = [1, 1]} : vector<8x384xf32> to vector<8x128xf32>
    %176 = arith.addf %175, %18 : vector<8x128xf32>
    %177 = arith.mulf %165, %176 : vector<8x128xf32>
    %178 = arith.addf %174, %177 : vector<8x128xf32>
    %179 = math.tanh %178 : vector<8x128xf32>
    %cst_48 = arith.constant 1.000000e+00 : f32
    %180 = vector.broadcast %cst_48 : f32 to vector<8x128xf32>
    %181 = arith.subf %180, %173 : vector<8x128xf32>
    %182 = arith.mulf %181, %179 : vector<8x128xf32>
    %183 = arith.mulf %173, %151 : vector<8x128xf32>
    %184 = arith.addf %182, %183 : vector<8x128xf32>
    %c5_i32 = arith.constant 5 : i32
    %c8_i32_49 = arith.constant 8 : i32
    %185 = arith.muli %c5_i32, %c8_i32_49 : i32
    %186 = tpu.assume_multiple %185, 8 : i32
    %187 = arith.index_cast %186 : i32 to index
    %c0_50 = arith.constant 0 : index
    %188 = vector.load %arg15[%187, %c0_50] : memref<64x384xf32, #tpu.memory_space<vmem>>, vector<8x384xf32>
    %189 = arith.truncf %184 : vector<8x128xf32> to vector<8x128xbf16>
    %cst_51 = arith.constant dense<0.000000e+00> : vector<8x384xf32>
    %190 = tpu.matmul %189, %15, %cst_51 {dimension_numbers = #tpu.dot_dimension_numbers<[1], [0], [0], [1], [0, 0, 1, 1], [], []>} : vector<8x128xbf16>, vector<128x384xbf16>, vector<8x384xf32> -> vector<8x384xf32>
    %191 = vector.extract_strided_slice %188 {offsets = [0, 0], sizes = [8, 128], strides = [1, 1]} : vector<8x384xf32> to vector<8x128xf32>
    %192 = vector.extract_strided_slice %190 {offsets = [0, 0], sizes = [8, 128], strides = [1, 1]} : vector<8x384xf32> to vector<8x128xf32>
    %193 = arith.addf %191, %192 : vector<8x128xf32>
    %194 = arith.negf %193 : vector<8x128xf32>
    %195 = math.exp %194 : vector<8x128xf32>
    %cst_52 = arith.constant 1.000000e+00 : f32
    %196 = vector.broadcast %cst_52 : f32 to vector<8x128xf32>
    %197 = arith.addf %196, %195 : vector<8x128xf32>
    %198 = arith.divf %196, %197 : vector<8x128xf32>
    %199 = vector.extract_strided_slice %188 {offsets = [0, 128], sizes = [8, 128], strides = [1, 1]} : vector<8x384xf32> to vector<8x128xf32>
    %200 = vector.extract_strided_slice %190 {offsets = [0, 128], sizes = [8, 128], strides = [1, 1]} : vector<8x384xf32> to vector<8x128xf32>
    %201 = arith.addf %199, %200 : vector<8x128xf32>
    %202 = arith.negf %201 : vector<8x128xf32>
    %203 = math.exp %202 : vector<8x128xf32>
    %cst_53 = arith.constant 1.000000e+00 : f32
    %204 = vector.broadcast %cst_53 : f32 to vector<8x128xf32>
    %205 = arith.addf %204, %203 : vector<8x128xf32>
    %206 = arith.divf %204, %205 : vector<8x128xf32>
    %207 = vector.extract_strided_slice %188 {offsets = [0, 256], sizes = [8, 128], strides = [1, 1]} : vector<8x384xf32> to vector<8x128xf32>
    %208 = vector.extract_strided_slice %190 {offsets = [0, 256], sizes = [8, 128], strides = [1, 1]} : vector<8x384xf32> to vector<8x128xf32>
    %209 = arith.addf %208, %18 : vector<8x128xf32>
    %210 = arith.mulf %198, %209 : vector<8x128xf32>
    %211 = arith.addf %207, %210 : vector<8x128xf32>
    %212 = math.tanh %211 : vector<8x128xf32>
    %cst_54 = arith.constant 1.000000e+00 : f32
    %213 = vector.broadcast %cst_54 : f32 to vector<8x128xf32>
    %214 = arith.subf %213, %206 : vector<8x128xf32>
    %215 = arith.mulf %214, %212 : vector<8x128xf32>
    %216 = arith.mulf %206, %184 : vector<8x128xf32>
    %217 = arith.addf %215, %216 : vector<8x128xf32>
    %c6_i32 = arith.constant 6 : i32
    %c8_i32_55 = arith.constant 8 : i32
    %218 = arith.muli %c6_i32, %c8_i32_55 : i32
    %219 = tpu.assume_multiple %218, 8 : i32
    %220 = arith.index_cast %219 : i32 to index
    %c0_56 = arith.constant 0 : index
    %221 = vector.load %arg15[%220, %c0_56] : memref<64x384xf32, #tpu.memory_space<vmem>>, vector<8x384xf32>
    %222 = arith.truncf %217 : vector<8x128xf32> to vector<8x128xbf16>
    %cst_57 = arith.constant dense<0.000000e+00> : vector<8x384xf32>
    %223 = tpu.matmul %222, %15, %cst_57 {dimension_numbers = #tpu.dot_dimension_numbers<[1], [0], [0], [1], [0, 0, 1, 1], [], []>} : vector<8x128xbf16>, vector<128x384xbf16>, vector<8x384xf32> -> vector<8x384xf32>
    %224 = vector.extract_strided_slice %221 {offsets = [0, 0], sizes = [8, 128], strides = [1, 1]} : vector<8x384xf32> to vector<8x128xf32>
    %225 = vector.extract_strided_slice %223 {offsets = [0, 0], sizes = [8, 128], strides = [1, 1]} : vector<8x384xf32> to vector<8x128xf32>
    %226 = arith.addf %224, %225 : vector<8x128xf32>
    %227 = arith.negf %226 : vector<8x128xf32>
    %228 = math.exp %227 : vector<8x128xf32>
    %cst_58 = arith.constant 1.000000e+00 : f32
    %229 = vector.broadcast %cst_58 : f32 to vector<8x128xf32>
    %230 = arith.addf %229, %228 : vector<8x128xf32>
    %231 = arith.divf %229, %230 : vector<8x128xf32>
    %232 = vector.extract_strided_slice %221 {offsets = [0, 128], sizes = [8, 128], strides = [1, 1]} : vector<8x384xf32> to vector<8x128xf32>
    %233 = vector.extract_strided_slice %223 {offsets = [0, 128], sizes = [8, 128], strides = [1, 1]} : vector<8x384xf32> to vector<8x128xf32>
    %234 = arith.addf %232, %233 : vector<8x128xf32>
    %235 = arith.negf %234 : vector<8x128xf32>
    %236 = math.exp %235 : vector<8x128xf32>
    %cst_59 = arith.constant 1.000000e+00 : f32
    %237 = vector.broadcast %cst_59 : f32 to vector<8x128xf32>
    %238 = arith.addf %237, %236 : vector<8x128xf32>
    %239 = arith.divf %237, %238 : vector<8x128xf32>
    %240 = vector.extract_strided_slice %221 {offsets = [0, 256], sizes = [8, 128], strides = [1, 1]} : vector<8x384xf32> to vector<8x128xf32>
    %241 = vector.extract_strided_slice %223 {offsets = [0, 256], sizes = [8, 128], strides = [1, 1]} : vector<8x384xf32> to vector<8x128xf32>
    %242 = arith.addf %241, %18 : vector<8x128xf32>
    %243 = arith.mulf %231, %242 : vector<8x128xf32>
    %244 = arith.addf %240, %243 : vector<8x128xf32>
    %245 = math.tanh %244 : vector<8x128xf32>
    %cst_60 = arith.constant 1.000000e+00 : f32
    %246 = vector.broadcast %cst_60 : f32 to vector<8x128xf32>
    %247 = arith.subf %246, %239 : vector<8x128xf32>
    %248 = arith.mulf %247, %245 : vector<8x128xf32>
    %249 = arith.mulf %239, %217 : vector<8x128xf32>
    %250 = arith.addf %248, %249 : vector<8x128xf32>
    %c7_i32 = arith.constant 7 : i32
    %c8_i32_61 = arith.constant 8 : i32
    %251 = arith.muli %c7_i32, %c8_i32_61 : i32
    %252 = tpu.assume_multiple %251, 8 : i32
    %253 = arith.index_cast %252 : i32 to index
    %c0_62 = arith.constant 0 : index
    %254 = vector.load %arg15[%253, %c0_62] : memref<64x384xf32, #tpu.memory_space<vmem>>, vector<8x384xf32>
    %255 = arith.truncf %250 : vector<8x128xf32> to vector<8x128xbf16>
    %cst_63 = arith.constant dense<0.000000e+00> : vector<8x384xf32>
    %256 = tpu.matmul %255, %15, %cst_63 {dimension_numbers = #tpu.dot_dimension_numbers<[1], [0], [0], [1], [0, 0, 1, 1], [], []>} : vector<8x128xbf16>, vector<128x384xbf16>, vector<8x384xf32> -> vector<8x384xf32>
    %257 = vector.extract_strided_slice %254 {offsets = [0, 0], sizes = [8, 128], strides = [1, 1]} : vector<8x384xf32> to vector<8x128xf32>
    %258 = vector.extract_strided_slice %256 {offsets = [0, 0], sizes = [8, 128], strides = [1, 1]} : vector<8x384xf32> to vector<8x128xf32>
    %259 = arith.addf %257, %258 : vector<8x128xf32>
    %260 = arith.negf %259 : vector<8x128xf32>
    %261 = math.exp %260 : vector<8x128xf32>
    %cst_64 = arith.constant 1.000000e+00 : f32
    %262 = vector.broadcast %cst_64 : f32 to vector<8x128xf32>
    %263 = arith.addf %262, %261 : vector<8x128xf32>
    %264 = arith.divf %262, %263 : vector<8x128xf32>
    %265 = vector.extract_strided_slice %254 {offsets = [0, 128], sizes = [8, 128], strides = [1, 1]} : vector<8x384xf32> to vector<8x128xf32>
    %266 = vector.extract_strided_slice %256 {offsets = [0, 128], sizes = [8, 128], strides = [1, 1]} : vector<8x384xf32> to vector<8x128xf32>
    %267 = arith.addf %265, %266 : vector<8x128xf32>
    %268 = arith.negf %267 : vector<8x128xf32>
    %269 = math.exp %268 : vector<8x128xf32>
    %cst_65 = arith.constant 1.000000e+00 : f32
    %270 = vector.broadcast %cst_65 : f32 to vector<8x128xf32>
    %271 = arith.addf %270, %269 : vector<8x128xf32>
    %272 = arith.divf %270, %271 : vector<8x128xf32>
    %273 = vector.extract_strided_slice %254 {offsets = [0, 256], sizes = [8, 128], strides = [1, 1]} : vector<8x384xf32> to vector<8x128xf32>
    %274 = vector.extract_strided_slice %256 {offsets = [0, 256], sizes = [8, 128], strides = [1, 1]} : vector<8x384xf32> to vector<8x128xf32>
    %275 = arith.addf %274, %18 : vector<8x128xf32>
    %276 = arith.mulf %264, %275 : vector<8x128xf32>
    %277 = arith.addf %273, %276 : vector<8x128xf32>
    %278 = math.tanh %277 : vector<8x128xf32>
    %cst_66 = arith.constant 1.000000e+00 : f32
    %279 = vector.broadcast %cst_66 : f32 to vector<8x128xf32>
    %280 = arith.subf %279, %272 : vector<8x128xf32>
    %281 = arith.mulf %280, %278 : vector<8x128xf32>
    %282 = arith.mulf %272, %250 : vector<8x128xf32>
    %283 = arith.addf %281, %282 : vector<8x128xf32>
    %c8_i32_67 = arith.constant 8 : i32
    %284 = arith.truncf %283 : vector<8x128xf32> to vector<8x128xbf16>
    %c0_68 = arith.constant 0 : index
    %c0_69 = arith.constant 0 : index
    %285 = vector.load %arg6[%c0_68, %c0_69] : memref<128x128xbf16, #tpu.memory_space<vmem>>, vector<128x128xbf16>
    %cst_70 = arith.constant dense<0.000000e+00> : vector<8x128xf32>
    %286 = tpu.matmul %284, %285, %cst_70 {dimension_numbers = #tpu.dot_dimension_numbers<[1], [0], [0], [1], [0, 0, 1, 1], [], []>} : vector<8x128xbf16>, vector<128x128xbf16>, vector<8x128xf32> -> vector<8x128xf32>
    %c0_71 = arith.constant 0 : index
    %c0_72 = arith.constant 0 : index
    %287 = vector.load %arg7[%c0_71, %c0_72] : memref<1x128xf32, #tpu.memory_space<vmem>>, vector<1x128xf32>
    %288 = vector.broadcast %287 : vector<1x128xf32> to vector<8x128xf32>
    %289 = arith.addf %286, %288 : vector<8x128xf32>
    %cst_73 = arith.constant 0.000000e+00 : f32
    %290 = vector.broadcast %cst_73 : f32 to vector<8x128xf32>
    %291 = arith.maximumf %289, %290 : vector<8x128xf32>
    %292 = arith.mulf %291, %14 : vector<8x128xf32>
    %293 = arith.truncf %292 : vector<8x128xf32> to vector<8x128xbf16>
    %c0_74 = arith.constant 0 : index
    %c0_75 = arith.constant 0 : index
    %294 = vector.load %arg10[%c0_74, %c0_75] : memref<128x256xbf16, #tpu.memory_space<vmem>>, vector<128x256xbf16>
    %cst_76 = arith.constant dense<0.000000e+00> : vector<8x256xf32>
    %295 = tpu.matmul %293, %294, %cst_76 {dimension_numbers = #tpu.dot_dimension_numbers<[1], [0], [0], [1], [0, 0, 1, 1], [], []>} : vector<8x128xbf16>, vector<128x256xbf16>, vector<8x256xf32> -> vector<8x256xf32>
    %c0_77 = arith.constant 0 : index
    %c0_78 = arith.constant 0 : index
    %296 = vector.load %arg11[%c0_77, %c0_78] : memref<1x256xf32, #tpu.memory_space<vmem>>, vector<1x256xf32>
    %297 = vector.broadcast %296 : vector<1x256xf32> to vector<8x256xf32>
    %298 = arith.addf %295, %297 : vector<8x256xf32>
    %cst_79 = arith.constant 0.000000e+00 : f32
    %299 = vector.broadcast %cst_79 : f32 to vector<8x256xf32>
    %300 = arith.maximumf %298, %299 : vector<8x256xf32>
    %301 = arith.truncf %300 : vector<8x256xf32> to vector<8x256xbf16>
    %c0_80 = arith.constant 0 : index
    %c0_81 = arith.constant 0 : index
    %302 = vector.load %arg12[%c0_80, %c0_81] : memref<256x128xbf16, #tpu.memory_space<vmem>>, vector<256x128xbf16>
    %cst_82 = arith.constant dense<0.000000e+00> : vector<8x128xf32>
    %303 = tpu.matmul %301, %302, %cst_82 {dimension_numbers = #tpu.dot_dimension_numbers<[1], [0], [0], [1], [0, 0, 1, 1], [], []>} : vector<8x256xbf16>, vector<256x128xbf16>, vector<8x128xf32> -> vector<8x128xf32>
    %c0_83 = arith.constant 0 : index
    %c0_84 = arith.constant 0 : index
    %304 = vector.load %arg13[%c0_83, %c0_84] : memref<1x128xf32, #tpu.memory_space<vmem>>, vector<1x128xf32>
    %305 = vector.broadcast %304 : vector<1x128xf32> to vector<8x128xf32>
    %306 = arith.addf %303, %305 : vector<8x128xf32>
    %c0_85 = arith.constant 0 : index
    %c0_86 = arith.constant 0 : index
    %307 = vector.load %arg14[%c0_85, %c0_86] : memref<8x128xf32, #tpu.memory_space<vmem>>, vector<8x128xf32>
    tpu.vector_store %arg14[%c0_85, %c0_86], %306 {strides = array<i32>} : memref<8x128xf32, #tpu.memory_space<vmem>>, vector<8x128xf32>,
    return
  }
}

</mosaic_0001>

<bundles_post_ra>
// kernel: tpu_custom_call.1
= control target key start
LH: loop header
LB: loop body
LE: loop exit
PB: predicated region body
PF: predicated region fallthrough
CT: control target
= control target key end

     0   :  { %19 = vsyncpa [#allocation4], 0  ;;  %s3304_s0 = inlined_call_operand.hbm [shape: bf16[64,128], index: 0, kind: input, shape index: {}]   ;;  %s3305_s1 = inlined_call_operand.hbm [shape: bf16[8,128], index: 1, kind: input, shape index: {}]   ;;  %s3306_s2 = inlined_call_operand.hbm [shape: bf16[128,384], index: 2, kind: input, shape index: {}]   ;;  %s3307_s3 = inlined_call_operand.hbm [shape: f32[1,384], index: 3, kind: input, shape index: {}]   ;;  %s3308_s4 = inlined_call_operand.hbm [shape: bf16[128,384], index: 4, kind: input, shape index: {}]   ;;  %s3309_s5 = inlined_call_operand.vmem [shape: f32[1,128], index: 5, kind: input, shape index: {}]   ;;  %s3310_s6 = inlined_call_operand.hbm [shape: bf16[128,128], index: 6, kind: input, shape index: {}]   ;;  %s3311_s7 = inlined_call_operand.vmem [shape: f32[1,128], index: 7, kind: input, shape index: {}]   ;;  %s3312_s8 = inlined_call_operand.hbm [shape: bf16[128,128], index: 8, kind: input, shape index: {}]   ;;  %s3313_s9 = inlined_call_operand.vmem [shape: f32[1,128], index: 9, kind: input, shape index: {}]   ;;  %s3314_s10 = inlined_call_operand.hbm [shape: bf16[128,256], index: 10, kind: input, shape index: {}]   ;;  %s3315_s11 = inlined_call_operand.vmem [shape: f32[1,256], index: 11, kind: input, shape index: {}]   ;;  %s3316_s12 = inlined_call_operand.hbm [shape: bf16[256,128], index: 12, kind: input, shape index: {}]   ;;  %s3317_s13 = inlined_call_operand.vmem [shape: f32[1,128], index: 13, kind: input, shape index: {}]   ;;  %s3318_s14 = inlined_call_operand.hbm [shape: f32[8,128], index: 14, kind: output, shape index: {}]  }
   0x1   :  { %20 = vsyncpa [#allocation7], 0 }
   0x2   :  { %21 = vsyncpa [#allocation10], 0 }
   0x3   :  { %22 = vsyncpa [#allocation13], 0 }
   0x4   :  { %23 = vsyncpa [#allocation16], 0  ;;  %s43_s15 = sshll.u32 %s3305_s1, 4  ;;  %s44_s15 = int_to_ptr.hbm [resolvable:$true] %s43_s15 }
   0x5   :  { %24 = vsyncpa [#allocation5], 0  ;;  %s2768_s16 = smov [#allocation6]   ;;  %s67_s20 = sshll.u32 %s3307_s3, 4  ;;  %s68_s20 = int_to_ptr.hbm [resolvable:$true] %s67_s20 }
   0x6   :  { %s45_s17 = sshll.u32 %s2768_s16, 4  ;;  %s2769_s21 = smov [#allocation9]   ;;  %s46_s17 = int_to_ptr.vmem [resolvable:$true] %s45_s17 }
   0x7   :  { %48 = dma.hbm_to_vmem [thread:$0]  %s44_s15, 64, %s46_s17, [#allocation7]  }
   0x8   :  { %s69_s22 = sshll.u32 %s2769_s21, 4  ;;  %s92_s25 = sshll.u32 %s3310_s6, 4  ;;  %s70_s22 = int_to_ptr.vmem [resolvable:$true] %s69_s22  ;;  %s93_s25 = int_to_ptr.hbm [resolvable:$true] %s92_s25 }
   0x9   :  { %72 = dma.hbm_to_vmem [thread:$0]  %s68_s20, 48, %s70_s22, [#allocation10]  }
   0xa   :  { %s2770_s1 = smov [#allocation12]   ;;  %s122_s29 = sshll.u32 %s3314_s10, 4  ;;  %s123_s29 = int_to_ptr.hbm [resolvable:$true] %s122_s29 }
   0xb   :  { %s94_s26 = sshll.u32 %s2770_s1, 4  ;;  %s2771_s30 = smov 64   ;;  %s95_s26 = int_to_ptr.vmem [resolvable:$true] %s94_s26 }
   0xc   :  { %s2772_s3 = smov 4   ;;  %s2773_s15 = smov [#allocation15]  }
   0xd   :  { %100 = dma.hbm_to_vmem [thread:$0]  %s93_s25, 1024, %s95_s26, [#allocation13], %s2771_s30, %s2771_s30, %s2772_s3  }
   0xe   :  { %s124_s16 = sshll.u32 %s2773_s15, 4  ;;  %s2774_s17 = smov 128   ;;  %s125_s16 = int_to_ptr.vmem [resolvable:$true] %s124_s16 }
   0xf   :  { %s2775_s6 = smov 8   ;;  %s29_s20 = sshll.u32 %s3304_s0, 4  ;;  %s30_s20 = int_to_ptr.hbm [resolvable:$true] %s29_s20 }
  0x10   :  { %130 = dma.hbm_to_vmem [thread:$0]  %s123_s29, 2048, %s125_s16, [#allocation16], %s2774_s17, %s2774_s17, %s2775_s6  }
  0x11   :  { %s2776_s21 = smov [#allocation3]   ;;  %s53_s24 = sshll.u32 %s3306_s2, 4  ;;  %s54_s24 = int_to_ptr.hbm [resolvable:$true] %s53_s24 }
  0x12   :  { %s31_s10 = sshll.u32 %s2776_s21, 4  ;;  %s2777_s25 = smov [#allocation8]   ;;  %s32_s10 = int_to_ptr.vmem [resolvable:$true] %s31_s10 }
  0x13   :  { %37 = dma.hbm_to_vmem [thread:$0]  %s30_s20, 512, %s32_s10, [#allocation4], %s2771_s30, %s2771_s30, %s2772_s3  }
  0x14   :  { %s55_s1 = sshll.u32 %s2777_s25, 4  ;;  %s2778_s26 = smov 192   ;;  %s56_s1 = int_to_ptr.vmem [resolvable:$true] %s55_s1 }
  0x15   :  { %s2779_s27 = smov 12   ;;  %s77_s29 = sshll.u32 %s3308_s4, 4  ;;  %s78_s29 = int_to_ptr.hbm [resolvable:$true] %s77_s29 }
  0x16   :  { %61 = dma.hbm_to_vmem [thread:$0]  %s54_s24, 3072, %s56_s1, [#allocation7], %s2778_s26, %s2778_s26, %s2779_s27  }
  0x17   :  { %s2780_s15 = smov [#allocation11]   ;;  %s107_s6 = sshll.u32 %s3312_s8, 4  ;;  %s108_s6 = int_to_ptr.hbm [resolvable:$true] %s107_s6 }
  0x18   :  { %s79_s16 = sshll.u32 %s2780_s15, 4  ;;  %s2781_s18 = smov [#allocation14]   ;;  %s80_s16 = int_to_ptr.vmem [resolvable:$true] %s79_s16 }
  0x19   :  { %85 = dma.hbm_to_vmem [thread:$0]  %s78_s29, 3072, %s80_s16, [#allocation10], %s2778_s26, %s2778_s26, %s2779_s27  }
  0x1a   :  { %s109_s19 = sshll.u32 %s2781_s18, 4  ;;  %s137_s10 = sshll.u32 %s3316_s12, 4  ;;  %s110_s19 = int_to_ptr.vmem [resolvable:$true] %s109_s19  ;;  %s138_s10 = int_to_ptr.hbm [resolvable:$true] %s137_s10 }
  0x1b   :  { %115 = dma.hbm_to_vmem [thread:$0]  %s108_s6, 1024, %s110_s19, [#allocation13], %s2771_s30, %s2771_s30, %s2772_s3  }
  0x1c   :  { %s2782_s4 = smov [#allocation17]  }
  0x1d   :  { %s139_s22 = sshll.u32 %s2782_s4, 4  ;;  %s140_s22 = int_to_ptr.vmem [resolvable:$true] %s139_s22 }
  0x1e   :  { %145 = dma.hbm_to_vmem [thread:$0]  %s138_s10, 2048, %s140_s22, [#allocation16], %s2771_s30, %s2771_s30, %s2772_s3  }
  0x1f   :  { %2756 = dma.done.wait [#allocation4], 512  }
  0x20   :  { %2757 = vsyncadd [#allocation4], 4294966784 }
  0x21   :  { %2758 = dma.done.wait [#allocation7], 3136  }
  0x22   :  { %2759 = vsyncadd [#allocation7], 4294964160 }
  0x23   :  { %2760 = dma.done.wait [#allocation10], 3120  }
  0x24   :  { %2761 = vsyncadd [#allocation10], 4294964176 }
  0x25   :  { %2762 = dma.done.wait [#allocation13], 2048  }
  0x26   :  { %2763 = vsyncadd [#allocation13], 4294965248 }
  0x27   :  { %2764 = dma.done.wait [#allocation16], 4096  }
  0x28   :  { %2765 = vsyncadd [#allocation16], 4294963200  ;;  %v2000_v0 = vld [vmem:[#allocation8 + $0xa8] sm:$0xf]  ;;  %v2340_v1 = vld [vmem:[#allocation8 + $0xb0] sm:$0xf0] }
  0x29   :  { %v2339_v2 = vld [vmem:[#allocation8 + $0xac] sm:$0xf]  ;;  %v2001_v3 = vor.u32 %v2340_v1, %v2000_v0  ;;  %v2002_v4 = vld [vmem:[#allocation8 + $0xb4] sm:$0xf0]  ;;  %v2349_v5 = vld [vmem:[#allocation14 + $0x38] sm:$0xff]  ;;  %s1877_s29 = sshll.u32 %s3318_s14, 4  ;;  %s1878_s29 = int_to_ptr.hbm [resolvable:$true] %s1877_s29 }
  0x2a   :  { %v1988_v6 = vld [vmem:[#allocation8 + $0x90] sm:$0xf]  ;;  %v2005_v7 = vor.u32 %v2339_v2, %v2002_v4  ;;  %v2337_v8 = vld [vmem:[#allocation8 + $0x98] sm:$0xf0]  ;;  %v2336_v9 = vld [vmem:[#allocation8 + $0x94] sm:$0xf]  ;;  %565 = vmatpush.bf16.msra.mxu3 %v2349_v5 }
  0x2b   :  { %v1990_v10 = vld [vmem:[#allocation8 + $0x9c] sm:$0xf0]  ;;  %385 = vmatpush.bf16.msra.mxu0 %v2001_v3  ;;  %v1989_v11 = vor.u32 %v2337_v8, %v1988_v6  ;;  %v2348_v12 = vld [vmem:[#allocation14 + $0x30] sm:$0xff]  ;;  %v2334_v15 = vld [vmem:[#allocation8 + $0x80] sm:$0xf0] }
  0x2c   :  { %414 = vmatpush.bf16.msra.mxu1 %v2005_v7  ;;  %v1993_v13 = vor.u32 %v2336_v9, %v1990_v10  ;;  %v1976_v14 = vld [vmem:[#allocation8 + $0x78] sm:$0xf]  ;;  %v2333_v16 = vld [vmem:[#allocation8 + $0x7c] sm:$0xf]  ;;  %v1978_v17 = vld [vmem:[#allocation8 + $0x84] sm:$0xf0] }
  0x2d   :  { %v1977_v18 = vor.u32 %v2334_v15, %v1976_v14  ;;  %v2347_v19 = vld [vmem:[#allocation14 + $0x28] sm:$0xff]  ;;  %v1981_v20 = vor.u32 %v2333_v16, %v1978_v17  ;;  %v1964_v21 = vld [vmem:[#allocation8 + $0x60] sm:$0xf]  ;;  %v2330_v23 = vld [vmem:[#allocation8 + $0x64] sm:$0xf] }
  0x2e   :  { %566 = vmatpush.bf16.msra.mxu3 %v2348_v12  ;;  %v2331_v22 = vld [vmem:[#allocation8 + $0x68] sm:$0xf0]  ;;  %v1966_v24 = vld [vmem:[#allocation8 + $0x6c] sm:$0xf0]  ;;  %v2346_v26 = vld [vmem:[#allocation14 + $0x20] sm:$0xff] }
  0x2f   :  { %386 = vmatpush.bf16.msra.mxu0 %v1989_v11  ;;  %v1965_v25 = vor.u32 %v2331_v22, %v1964_v21  ;;  %v1969_v27 = vor.u32 %v2330_v23, %v1966_v24  ;;  %v1952_v28 = vld [vmem:[#allocation8 + $0x48] sm:$0xf]  ;;  %v2328_v29 = vld [vmem:[#allocation8 + $0x50] sm:$0xf0]  ;;  %v2327_v30 = vld [vmem:[#allocation8 + $0x4c] sm:$0xf] }
  0x30   :  { %415 = vmatpush.bf16.msra.mxu1 %v1993_v13  ;;  %v1954_v31 = vld [vmem:[#allocation8 + $0x54] sm:$0xf0]  ;;  %v1953_v32 = vor.u32 %v2328_v29, %v1952_v28  ;;  %v2345_v33 = vld [vmem:[#allocation14 + $0x18] sm:$0xff]  ;;  %v1940_v35 = vld [vmem:[#allocation8 + $0x30] sm:$0xf] }
  0x31   :  { %v1957_v34 = vor.u32 %v2327_v30, %v1954_v31  ;;  %v2325_v36 = vld [vmem:[#allocation8 + $0x38] sm:$0xf0]  ;;  %v2324_v37 = vld [vmem:[#allocation8 + $0x34] sm:$0xf]  ;;  %v1942_v38 = vld [vmem:[#allocation8 + $0x3c] sm:$0xf0] }
  0x32   :  { %567 = vmatpush.bf16.msra.mxu3 %v2347_v19  ;;  %v1941_v39 = vor.u32 %v2325_v36, %v1940_v35  ;;  %v2344_v40 = vld [vmem:[#allocation14 + $0x10] sm:$0xff]  ;;  %v1945_v41 = vor.u32 %v2324_v37, %v1942_v38  ;;  %v2322_v43 = vld [vmem:[#allocation8 + $0x20] sm:$0xf0]  ;;  %v2321_v44 = vld [vmem:[#allocation8 + $0x1c] sm:$0xf] }
  0x33   :  { %387 = vmatpush.bf16.msra.mxu0 %v1977_v18  ;;  %v1928_v42 = vld [vmem:[#allocation8 + $0x18] sm:$0xf]  ;;  %v1930_v45 = vld [vmem:[#allocation8 + $0x24] sm:$0xf0]  ;;  %v2343_v47 = vld [vmem:[#allocation14 + $0x8] sm:$0xff] }
  0x34   :  { %416 = vmatpush.bf16.msra.mxu1 %v1981_v20  ;;  %v1929_v46 = vor.u32 %v2322_v43, %v1928_v42  ;;  %v1916_v48 = vld [vmem:[#allocation8] sm:$0xf]  ;;  %v1933_v49 = vor.u32 %v2321_v44, %v1930_v45  ;;  %v2319_v50 = vld [vmem:[#allocation8 + $0x8] sm:$0xf0]  ;;  %v2318_v51 = vld [vmem:[#allocation8 + $0x4] sm:$0xf] }
  0x35   :  { %v1918_v52 = vld [vmem:[#allocation8 + $0xc] sm:$0xf0]  ;;  %v2128_v53 = vld [vmem:[#allocation11 + $0xa8] sm:$0xf]  ;;  %v2372_v54 = vld [vmem:[#allocation11 + $0xb0] sm:$0xf0]  ;;  %v1917_v59 = vor.u32 %v2319_v50, %v1916_v48 }
  0x36   :  { %568 = vmatpush.bf16.msra.mxu3 %v2346_v26  ;;  %v2371_v55 = vld [vmem:[#allocation11 + $0xac] sm:$0xf]  ;;  %v2130_v56 = vld [vmem:[#allocation11 + $0xb4] sm:$0xf0]  ;;  %v2136_v57 = vld [vmem:[#allocation11 + $0xb0] sm:$0xf]  ;;  %v1921_v61 = vor.u32 %v2318_v51, %v1918_v52  ;;  %v2899_v62 = vor.u32 %v2372_v54, %v2128_v53 }
  0x37   :  { %388 = vmatpush.bf16.msra.mxu0 %v1965_v25  ;;  %v2373_v58 = vld [vmem:[#allocation11 + $0xb8] sm:$0xf0]  ;;  %v2342_v60 = vld [vmem:[#allocation14] sm:$0xff]  ;;  %v2116_v0 = vld [vmem:[#allocation11 + $0x90] sm:$0xf]  ;;  %v2903_v2 = vor.u32 %v2371_v55, %v2130_v56 }
  0x38   :  { %417 = vmatpush.bf16.msra.mxu1 %v1969_v27  ;;  %v2901_v63 = vld [vmem:[#allocation3] sm:$0xff]  ;;  %v2008_v1 = vld [vmem:[#allocation8 + $0xb0] sm:$0xf]  ;;  %v2368_v4 = vld [vmem:[#allocation11 + $0x94] sm:$0xf]  ;;  %v2905_v5 = vor.u32 %v2373_v58, %v2136_v57 }
  0x39   :  { %v2369_v3 = vld [vmem:[#allocation11 + $0x98] sm:$0xf0]  ;;  %v2341_v6 = vld [vmem:[#allocation8 + $0xb8] sm:$0xf0]  ;;  %v2118_v7 = vld [vmem:[#allocation11 + $0x9c] sm:$0xf0] }
  0x3a   :  { %569 = vmatpush.bf16.msra.mxu3 %v2345_v33  ;;  %v2124_v8 = vld [vmem:[#allocation11 + $0x98] sm:$0xf]  ;;  %v2370_v9 = vld [vmem:[#allocation11 + $0xa0] sm:$0xf0]  ;;  %v2009_v11 = vor.u32 %v2341_v6, %v2008_v1  ;;  %v2908_v12 = vor.u32 %v2369_v3, %v2116_v0  ;;  %v2911_v15 = vor.u32 %v2368_v4, %v2118_v7  ;;  %v1996_v17 = vld [vmem:[#allocation8 + $0x98] sm:$0xf] }
  0x3b   :  { %389 = vmatpush.bf16.msra.mxu0 %v1953_v32  ;;  %v496_v10 = vld [vmem:[#allocation6] sm:$0xf]  ;;  %v2366_v14 = vld [vmem:[#allocation11 + $0x80] sm:$0xf0]  ;;  %v2914_v16 = vor.u32 %v2370_v9, %v2124_v8  ;;  %v2338_v18 = vld [vmem:[#allocation8 + $0xa0] sm:$0xf0] }
  0x3c   :  { %418 = vmatpush.bf16.msra.mxu1 %v1957_v34  ;;  %v2104_v13 = vld [vmem:[#allocation11 + $0x78] sm:$0xf]  ;;  %v2365_v19 = vld [vmem:[#allocation11 + $0x7c] sm:$0xf]  ;;  %v2106_v20 = vld [vmem:[#allocation11 + $0x84] sm:$0xf0]  ;;  %443 = vmatpush.bf16.msra.mxu2 %v2009_v11  ;;  %v1997_v21 = vor.u32 %v2338_v18, %v1996_v17 }
  0x3d   :  { %v2112_v22 = vld [vmem:[#allocation11 + $0x80] sm:$0xf]  ;;  %v2919_v23 = vor.u32 %v2366_v14, %v2104_v13  ;;  %v2367_v24 = vld [vmem:[#allocation11 + $0x88] sm:$0xf0]  ;;  %v1984_v25 = vld [vmem:[#allocation8 + $0x80] sm:$0xf]  ;;  %v2922_v29 = vor.u32 %v2365_v19, %v2106_v20 }
  0x3e   :  { %570 = vmatpush.bf16.msra.mxu3 %v2344_v40  ;;  %v2335_v26 = vld [vmem:[#allocation8 + $0x88] sm:$0xf0]  ;;  %v2092_v27 = vld [vmem:[#allocation11 + $0x60] sm:$0xf]  ;;  %v2363_v28 = vld [vmem:[#allocation11 + $0x68] sm:$0xf0]  ;;  %v2925_v31 = vor.u32 %v2367_v24, %v2112_v22 }
  0x3f   :  { %390 = vmatpush.bf16.msra.mxu0 %v1941_v39  ;;  %v2362_v30 = vld [vmem:[#allocation11 + $0x64] sm:$0xf]  ;;  %v2094_v32 = vld [vmem:[#allocation11 + $0x6c] sm:$0xf0]  ;;  %v2100_v33 = vld [vmem:[#allocation11 + $0x68] sm:$0xf]  ;;  %v1985_v35 = vor.u32 %v2335_v26, %v1984_v25  ;;  %v2928_v36 = vor.u32 %v2363_v28, %v2092_v27 }
  0x40   :  { %419 = vmatpush.bf16.msra.mxu1 %v1945_v41  ;;  %v2364_v34 = vld [vmem:[#allocation11 + $0x70] sm:$0xf0]  ;;  %444 = vmatpush.bf16.msra.mxu2 %v1997_v21  ;;  %v1972_v37 = vld [vmem:[#allocation8 + $0x68] sm:$0xf]  ;;  %v2332_v38 = vld [vmem:[#allocation8 + $0x70] sm:$0xf0]  ;;  %v2931_v41 = vor.u32 %v2362_v30, %v2094_v32 }
  0x41   :  { %v2080_v39 = vld [vmem:[#allocation11 + $0x48] sm:$0xf]  ;;  %v2360_v40 = vld [vmem:[#allocation11 + $0x50] sm:$0xf0]  ;;  %v2934_v42 = vor.u32 %v2364_v34, %v2100_v33  ;;  %v2359_v43 = vld [vmem:[#allocation11 + $0x4c] sm:$0xf]  ;;  %v1973_v45 = vor.u32 %v2332_v38, %v1972_v37 }
  0x42   :  { %571 = vmatpush.bf16.msra.mxu3 %v2343_v47  ;;  %v2082_v44 = vld [vmem:[#allocation11 + $0x54] sm:$0xf0]  ;;  %v1960_v47 = vld [vmem:[#allocation8 + $0x50] sm:$0xf]  ;;  %v2357_v50 = vld [vmem:[#allocation11 + $0x38] sm:$0xf0] }
  0x43   :  { %391 = vmatpush.bf16.msra.mxu0 %v1929_v46  ;;  %v2937_v46 = vor.u32 %v2360_v40, %v2080_v39  ;;  %v2329_v48 = vld [vmem:[#allocation8 + $0x58] sm:$0xf0]  ;;  %v2940_v51 = vor.u32 %v2359_v43, %v2082_v44  ;;  %v2943_v52 = vld [vmem:[#allocation3 + $0x8] sm:$0xff]  ;;  %v2356_v53 = vld [vmem:[#allocation11 + $0x34] sm:$0xf]  ;;  %v2783_v39 = vmov 0  }
  0x44   :  { %420 = vmatpush.bf16.msra.mxu1 %v1933_v49  ;;  %445 = vmatpush.bf16.msra.mxu2 %v1985_v35  ;;  %v2068_v49 = vld [vmem:[#allocation11 + $0x30] sm:$0xf]  ;;  %v2070_v54 = vld [vmem:[#allocation11 + $0x3c] sm:$0xf0]  ;;  %v1961_v55 = vor.u32 %v2329_v48, %v1960_v47  ;;  %v2056_v57 = vld [vmem:[#allocation11 + $0x18] sm:$0xf] }
  0x45   :  { %v2946_v56 = vor.u32 %v2357_v50, %v2068_v49  ;;  %v2354_v58 = vld [vmem:[#allocation11 + $0x20] sm:$0xf0]  ;;  %v2088_v0 = vld [vmem:[#allocation11 + $0x50] sm:$0xf]  ;;  %v2361_v1 = vld [vmem:[#allocation11 + $0x58] sm:$0xf0] }
  0x46   :  { %572 = vmatpush.bf16.msra.mxu3 %v2342_v60  ;;  %v1948_v60 = vld [vmem:[#allocation8 + $0x38] sm:$0xf]  ;;  %v2353_v3 = vld [vmem:[#allocation11 + $0x1c] sm:$0xf]  ;;  %v2058_v4 = vld [vmem:[#allocation11 + $0x24] sm:$0xf0]  ;;  %v2953_v7 = vor.u32 %v2361_v1, %v2088_v0  ;;  %v2956_v9 = vor.u32 %v2354_v58, %v2056_v57 }
  0x47   :  { %392 = vmatpush.bf16.msra.mxu0 %v1917_v59  ;;  %v2949_v59 = vor.u32 %v2356_v53, %v2070_v54  ;;  %v1936_v8 = vld [vmem:[#allocation8 + $0x20] sm:$0xf]  ;;  %v2076_v11 = vld [vmem:[#allocation11 + $0x38] sm:$0xf]  ;;  %v2358_v13 = vld [vmem:[#allocation11 + $0x40] sm:$0xf0]  ;;  %v2959_v18 = vor.u32 %v2353_v3, %v2058_v4 }
  0x48   :  { %421 = vmatpush.bf16.msra.mxu1 %v1921_v61  ;;  %446 = vmatpush.bf16.msra.mxu2 %v1973_v45  ;;  %v2326_v61 = vld [vmem:[#allocation8 + $0x40] sm:$0xf0]  ;;  %v2351_v17 = vld [vmem:[#allocation11 + $0x8] sm:$0xf0]  ;;  %v2962_v19 = vor.u32 %v2358_v13, %v2076_v11  ;;  %v2350_v20 = vld [vmem:[#allocation11 + $0x4] sm:$0xf] }
  0x49   :  { %573 = vmatmul.bf16.vlgmr.msra.gmra.mxu3 %v496_v10  ;;  %v1949_v6 = vor.u32 %v2326_v61, %v1948_v60  ;;  %v2323_v10 = vld [vmem:[#allocation8 + $0x28] sm:$0xf0]  ;;  %v2044_v14 = vld [vmem:[#allocation11] sm:$0xf]  ;;  %v2046_v21 = vld [vmem:[#allocation11 + $0xc] sm:$0xf0] }
  0x4a   :  { %749 = vmatpush.bf16.msrb.mxu3 %v2899_v62  ;;  %393 = vmatmul.bf16.vlgmr.msra.gmra.mxu0 %v2901_v63  ;;  %v2064_v22 = vld [vmem:[#allocation11 + $0x20] sm:$0xf]  ;;  %v2355_v24 = vld [vmem:[#allocation11 + $0x28] sm:$0xf0]  ;;  %v1937_v25 = vor.u32 %v2323_v10, %v1936_v8  ;;  %v2965_v26 = vor.u32 %v2351_v17, %v2044_v14  ;;  %v1924_v27 = vld [vmem:[#allocation8 + $0x8] sm:$0xf]  ;;  %v2969_v30 = vor.u32 %v2350_v20, %v2046_v21 }
  0x4b   :  { %762 = vmatpush.bf16.msrb.mxu0 %v2903_v2  ;;  %422 = vmatmul.bf16.vlgmr.msra.gmra.mxu1 %v2901_v63  ;;  %v2320_v28 = vld [vmem:[#allocation8 + $0x10] sm:$0xf0]  ;;  %v2971_v32 = vor.u32 %v2355_v24, %v2064_v22  ;;  %v2052_v33 = vld [vmem:[#allocation11 + $0x8] sm:$0xf]  ;;  %v2352_v34 = vld [vmem:[#allocation11 + $0x10] sm:$0xf0] }
  0x4c   :  { %775 = vmatpush.bf16.msrb.mxu1 %v2905_v5  ;;  %447 = vmatpush.bf16.msra.mxu2 %v1961_v55  ;;  %v1925_v35 = vor.u32 %v2320_v28, %v1924_v27  ;;  %v2976_v37 = vor.u32 %v2352_v34, %v2052_v33  ;;  %v2316_v38 = vld [vmem:[#allocation3 + $0x10] sm:$0xff]  ;;  %v3045_v44 = vld [vmem:[#allocation9] sm:$0x7] }
  0x4d   :  { %v228_v45 = vperm.slane %v3045_v44, 1  ;;  %v227_v48 = vperm.slane %v3045_v44, 0 }
  0x4e   :  { %750 = vmatpush.bf16.msrb.mxu3 %v2908_v12 }
  0x4f   :  { %763 = vmatpush.bf16.msrb.mxu0 %v2911_v15 }
  0x50   :  { %776 = vmatpush.bf16.msrb.mxu1 %v2914_v16  ;;  %448 = vmatpush.bf16.msra.mxu2 %v1949_v6 }
  0x52   :  { %751 = vmatpush.bf16.msrb.mxu3 %v2919_v23 }
  0x53   :  { %764 = vmatpush.bf16.msrb.mxu0 %v2922_v29 }
  0x54   :  { %777 = vmatpush.bf16.msrb.mxu1 %v2925_v31  ;;  %449 = vmatpush.bf16.msra.mxu2 %v1937_v25 }
  0x56   :  { %752 = vmatpush.bf16.msrb.mxu3 %v2928_v36 }
  0x57   :  { %765 = vmatpush.bf16.msrb.mxu0 %v2931_v41 }
  0x58   :  { %778 = vmatpush.bf16.msrb.mxu1 %v2934_v42  ;;  %450 = vmatpush.bf16.msra.mxu2 %v1925_v35 }
  0x5a   :  { %753 = vmatpush.bf16.msrb.mxu3 %v2937_v46  ;;  %398 = vmatmul.bf16.gmra.mxu0 %v2943_v52 }
  0x5b   :  { %766 = vmatpush.bf16.msrb.mxu0 %v2940_v51  ;;  %427 = vmatmul.bf16.gmra.mxu1 %v2943_v52 }
  0x5c   :  { %779 = vmatpush.bf16.msrb.mxu1 %v2953_v7  ;;  %843 = vmatpush.bf16.msrb.mxu2 %v2899_v62 }
  0x5d   :  { %451 = vmatmul.bf16.vlgmr.msra.gmra.mxu2 %v2901_v63  ;;  %v2317_v63 = vld [vmem:[#allocation3 + $0x18] sm:$0xff] }
  0x5e   :  { %754 = vmatpush.bf16.msrb.mxu3 %v2946_v56 }
  0x5f   :  { %767 = vmatpush.bf16.msrb.mxu0 %v2949_v59 }
  0x60   :  { %780 = vmatpush.bf16.msrb.mxu1 %v2962_v19  ;;  %844 = vmatpush.bf16.msrb.mxu2 %v2908_v12 }
  0x62   :  { %755 = vmatpush.bf16.msrb.mxu3 %v2956_v9 }
  0x63   :  { %768 = vmatpush.bf16.msrb.mxu0 %v2959_v18 }
  0x64   :  { %781 = vmatpush.bf16.msrb.mxu1 %v2971_v32  ;;  %845 = vmatpush.bf16.msrb.mxu2 %v2919_v23 }
  0x66   :  { %756 = vmatpush.bf16.msrb.mxu3 %v2965_v26 }
  0x67   :  { %769 = vmatpush.bf16.msrb.mxu0 %v2969_v30 }
  0x68   :  { %782 = vmatpush.bf16.msrb.mxu1 %v2976_v37  ;;  %846 = vmatpush.bf16.msrb.mxu2 %v2928_v36 }
  0x69   :  { %757 = vmatmul.bf16.vlgmr.msrb.gmra.mxu3 %v2783_v39 }
  0x6a   :  { %856 = vmatpush.bf16.msra.mxu3 %v2903_v2  ;;  %403 = vmatmul.bf16.gmra.mxu0 %v2316_v38 }
  0x6b   :  { %869 = vmatpush.bf16.msra.mxu0 %v2905_v5  ;;  %432 = vmatmul.bf16.gmra.mxu1 %v2316_v38 }
  0x6c   :  { %937 = vmatpush.bf16.msra.mxu1 %v2899_v62  ;;  %847 = vmatpush.bf16.msrb.mxu2 %v2937_v46 }
  0x6d   :  { %456 = vmatmul.bf16.gmra.mxu2 %v2943_v52 }
  0x6e   :  { %857 = vmatpush.bf16.msra.mxu3 %v2911_v15 }
  0x6f   :  { %870 = vmatpush.bf16.msra.mxu0 %v2914_v16 }
  0x70   :  { %938 = vmatpush.bf16.msra.mxu1 %v2908_v12  ;;  %848 = vmatpush.bf16.msrb.mxu2 %v2946_v56 }
  0x72   :  { %858 = vmatpush.bf16.msra.mxu3 %v2922_v29 }
  0x73   :  { %871 = vmatpush.bf16.msra.mxu0 %v2925_v31 }
  0x74   :  { %939 = vmatpush.bf16.msra.mxu1 %v2919_v23  ;;  %849 = vmatpush.bf16.msrb.mxu2 %v2956_v9 }
  0x76   :  { %859 = vmatpush.bf16.msra.mxu3 %v2931_v41 }
  0x77   :  { %872 = vmatpush.bf16.msra.mxu0 %v2934_v42 }
  0x78   :  { %940 = vmatpush.bf16.msra.mxu1 %v2928_v36  ;;  %850 = vmatpush.bf16.msrb.mxu2 %v2965_v26 }
  0x7a   :  { %860 = vmatpush.bf16.msra.mxu3 %v2940_v51  ;;  %408 = vmatmul.bf16.gmra.mxu0 %v2317_v63 }
  0x7b   :  { %873 = vmatpush.bf16.msra.mxu0 %v2953_v7  ;;  %437 = vmatmul.bf16.gmra.mxu1 %v2317_v63 }
  0x7c   :  { %941 = vmatpush.bf16.msra.mxu1 %v2937_v46  ;;  %950 = vmatpush.bf16.msra.mxu2 %v2903_v2 }
  0x7d   :  { %461 = vmatmul.bf16.gmra.mxu2 %v2316_v38 }
  0x7e   :  { %861 = vmatpush.bf16.msra.mxu3 %v2949_v59 }
  0x7f   :  { %874 = vmatpush.bf16.msra.mxu0 %v2962_v19 }
  0x80   :  { %942 = vmatpush.bf16.msra.mxu1 %v2946_v56  ;;  %951 = vmatpush.bf16.msra.mxu2 %v2911_v15 }
  0x82   :  { %862 = vmatpush.bf16.msra.mxu3 %v2959_v18 }
  0x83   :  { %875 = vmatpush.bf16.msra.mxu0 %v2971_v32 }
  0x84   :  { %943 = vmatpush.bf16.msra.mxu1 %v2956_v9  ;;  %952 = vmatpush.bf16.msra.mxu2 %v2922_v29 }
  0x86   :  { %863 = vmatpush.bf16.msra.mxu3 %v2969_v30 }
  0x87   :  { %876 = vmatpush.bf16.msra.mxu0 %v2976_v37 }
  0x88   :  { %944 = vmatpush.bf16.msra.mxu1 %v2965_v26  ;;  %953 = vmatpush.bf16.msra.mxu2 %v2931_v41 }
  0x8a   :  { %963 = vmatpush.bf16.msrb.mxu3 %v2905_v5  ;;  %770 = vmatmul.bf16.vlgmr.msrb.gmra.mxu0 %v2783_v39 }
  0x8b   :  { %783 = vmatmul.bf16.vlgmr.msrb.gmra.mxu1 %v2783_v39  ;;  %1031 = vmatpush.bf16.msrb.mxu0 %v2899_v62 }
  0x8c   :  { %1044 = vmatpush.bf16.msrb.mxu1 %v2903_v2  ;;  %954 = vmatpush.bf16.msra.mxu2 %v2940_v51 }
  0x8d   :  { %466 = vmatmul.bf16.gmra.mxu2 %v2317_v63 }
  0x8e   :  { %964 = vmatpush.bf16.msrb.mxu3 %v2914_v16 }
  0x8f   :  { %1032 = vmatpush.bf16.msrb.mxu0 %v2908_v12 }
  0x90   :  { %1045 = vmatpush.bf16.msrb.mxu1 %v2911_v15  ;;  %955 = vmatpush.bf16.msra.mxu2 %v2949_v59 }
  0x92   :  { %965 = vmatpush.bf16.msrb.mxu3 %v2925_v31 }
  0x93   :  { %1033 = vmatpush.bf16.msrb.mxu0 %v2919_v23 }
  0x94   :  { %1046 = vmatpush.bf16.msrb.mxu1 %v2922_v29  ;;  %956 = vmatpush.bf16.msra.mxu2 %v2959_v18 }
  0x96   :  { %966 = vmatpush.bf16.msrb.mxu3 %v2934_v42 }
  0x97   :  { %1034 = vmatpush.bf16.msrb.mxu0 %v2928_v36 }
  0x98   :  { %1047 = vmatpush.bf16.msrb.mxu1 %v2931_v41  ;;  %957 = vmatpush.bf16.msra.mxu2 %v2969_v30 }
  0x9a   :  { %967 = vmatpush.bf16.msrb.mxu3 %v2953_v7 }
  0x9b   :  { %1035 = vmatpush.bf16.msrb.mxu0 %v2937_v46 }
  0x9c   :  { %1048 = vmatpush.bf16.msrb.mxu1 %v2940_v51 }
  0x9e   :  { %968 = vmatpush.bf16.msrb.mxu3 %v2962_v19 }
  0x9f   :  { %1036 = vmatpush.bf16.msrb.mxu0 %v2946_v56 }
  0xa0   :  { %1049 = vmatpush.bf16.msrb.mxu1 %v2949_v59 }
  0xa2   :  { %969 = vmatpush.bf16.msrb.mxu3 %v2971_v32 }
  0xa3   :  { %1037 = vmatpush.bf16.msrb.mxu0 %v2956_v9 }
  0xa4   :  { %1050 = vmatpush.bf16.msrb.mxu1 %v2959_v18 }
  0xa6   :  { %970 = vmatpush.bf16.msrb.mxu3 %v2976_v37 }
  0xa7   :  { %1038 = vmatpush.bf16.msrb.mxu0 %v2965_v26 }
  0xa8   :  { %1051 = vmatpush.bf16.msrb.mxu1 %v2969_v30 }
  0xc7   :  { %v394_v40 = vpop.f32.mrf.mxu0 }
  0xc8   :  { %v423_v43 = vpop.f32.mrf.mxu1  ;;  %v395_v10 = vadd.f32 %v394_v40, %v227_v48 }
  0xcc   :  { %v3048_v47 = vpop.f32.mrf.mxu3 }
  0xcd   :  { %3319 = vst [vmem:[#allocation25_spill] sm:$0xff] %v3048_v47 }
  0xcf   :  { %v396_v49 = vpop.f32.mrf.mxu0 }
  0xd0   :  { %v3051_v50 = vadd.f32 %v396_v49, %v227_v48  ;;  %v425_v52 = vpop.f32.mrf.mxu1 }
  0xd1   :  { %v3053_v53 = vadd.f32 %v425_v52, %v228_v45 }
  0xd4   :  { %v576_v54 = vpop.f32.mrf.mxu3 }
  0xd7   :  { %v399_v55 = vpop.f32.mrf.mxu0 }
  0xd8   :  { %v3055_v57 = vadd.f32 %v399_v55, %v227_v48  ;;  %v428_v58 = vpop.f32.mrf.mxu1  ;;  %v424_v55 = vadd.f32 %v423_v43, %v228_v45 }
  0xd9   :  { %v3057_v60 = vadd.f32 %v428_v58, %v228_v45 }
  0xdf   :  { %v401_v61 = vpop.f32.mrf.mxu0 }
  0xe0   :  { %v3059_v0 = vadd.f32 %v401_v61, %v227_v48  ;;  %v430_v1 = vpop.f32.mrf.mxu1 }
  0xe1   :  { %v3061_v3 = vadd.f32 %v430_v1, %v228_v45 }
  0xe7   :  { %v404_v4 = vpop.f32.mrf.mxu0 }
  0xe8   :  { %v3063_v6 = vadd.f32 %v404_v4, %v227_v48  ;;  %v433_v8 = vpop.f32.mrf.mxu1 }
  0xe9   :  { %v3065_v11 = vadd.f32 %v433_v8, %v228_v45 }
  0xec   :  { %v758_v13 = vpop.f32.mrf.mxu3 }
  0xed   :  { %v788_v14 = vadd.f32 %v758_v13, %v395_v10 }
  0xef   :  { %v2138_v17 = vmul.f32 -1.442695, %v788_v14  ;;  %v406_v20 = vpop.f32.mrf.mxu0 }
  0xf0   :  { %v3067_v21 = vadd.f32 %v406_v20, %v227_v48  ;;  %v435_v22 = vpop.f32.mrf.mxu1 }
  0xf1   :  { %2435 = vpow2.f32 %v2138_v17  ;;  %v3069_v24 = vadd.f32 %v435_v22, %v228_v45 }
  0xf4   :  { %v760_v25 = vpop.f32.mrf.mxu3 }
  0xf7   :  { %v2436_v27 = vpop.eup %2435  ;;  %v409_v28 = vpop.f32.mrf.mxu0 }
  0xf8   :  { %v792_v33 = vadd.f32 1.0, %v2436_v27  ;;  %v3071_v34 = vadd.f32 %v409_v28, %v227_v48  ;;  %v438_v35 = vpop.f32.mrf.mxu1  ;;  %v3086_v28 = vperm.slane %v3045_v44, 2 }
  0xf9   :  { %v3073_v38 = vadd.f32 %v438_v35, %v228_v45 }
  0xfa   :  { %2437 = vrcp.f32 %v792_v33  ;;  %v804_v22 = vand.u32 2147483648, %v792_v33  ;;  %vm798_vm1 = vweird.f32 %v792_v33  ;;  %v802_v43 = vand.u32 2147483647, %v792_v33 }
  0xfc   :  { %v805_v35 = vor.u32 1.1754944e-38, %v804_v22  ;;  %vm803_vm3 = vcmp.eq.f32.partialorder %v802_v43, 8.507059e+37 }
  0xff   :  { %v411_v39 = vpop.f32.mrf.mxu0 }
 0x100   :  { %v3075_v63 = vadd.f32 %v411_v39, %v227_v48  ;;  %v440_v40 = vpop.f32.mrf.mxu1  ;;  %v2438_v52 = vpop.eup %2437  ;;  %v3082_v48 = vld [vmem:[%s3309_s5] ss:$0 sm:$0xff] }
 0x101   :  { %v3077_v49 = vadd.f32 %v440_v40, %v228_v45  ;;  %v794_v54 = vmul.f32 %v2438_v52, %v792_v33  ;;  %vm799_vm0 = vweird.f32 %v2438_v52  ;;  %v452_v39 = vpop.f32.mrf.mxu2 }
 0x102   :  { %3320 = vst [vmem:[#allocation26_spill] sm:$0xff] %v3075_v63  ;;  %vm800_vm2 = vmor %vm798_vm1, %vm799_vm0 }
 0x103   :  { %3321 = vst [vmem:[#allocation27_spill] sm:$0xff] %v3077_v49  ;;  %v795_v4 = vsub.f32 1.0, %v794_v54 }
 0x105   :  { %v796_v10 = vmul.f32 %v2438_v52, %v795_v4 }
 0x107   :  { %v771_v58 = vpop.f32.mrf.mxu0  ;;  %v797_v17 = vadd.f32 %v2438_v52, %v796_v10 }
 0x108   :  { %v808_v61 = vadd.f32 %v771_v58, %v424_v55  ;;  %v784_v1 = vpop.f32.mrf.mxu1  ;;  %v453_v55 = vadd.f32 %v452_v39, %v3086_v28 }
 0x109   :  { %v801_v45 = vsel %vm800_vm2, %v2438_v52, %v797_v17  ;;  %v828_v27 = vadd.f32 %v3082_v48, %v784_v1 }
 0x10a   :  { %v2139_v8 = vmul.f32 -1.442695, %v808_v61  ;;  %v806_v40 = vsel %vm803_vm3, %v805_v35, %v801_v45 }
 0x10b   :  { %v829_v54 = vmul.f32 %v828_v27, %v806_v40 }
 0x10c   :  { %2439 = vpow2.f32 %v2139_v8 }
 0x10d   :  { %v830_v4 = vadd.f32 %v829_v54, %v453_v55 }
 0x10f   :  { %v773_v13 = vpop.f32.mrf.mxu0 }
 0x110   :  { %v786_v14 = vpop.f32.mrf.mxu1 }
 0x112   :  { %v2440_v20 = vpop.eup %2439 }
 0x113   :  { %v812_v25 = vadd.f32 1.0, %v2440_v20 }
 0x115   :  { %2441 = vrcp.f32 %v812_v25  ;;  %v824_v33 = vand.u32 2147483648, %v812_v25  ;;  %v822_v52 = vand.u32 2147483647, %v812_v25  ;;  %vm818_vm5 = vweird.f32 %v812_v25 }
 0x116   :  { %2443 = vtanh.f32 %v830_v4 }
 0x117   :  { %v825_v44 = vor.u32 1.1754944e-38, %v824_v33  ;;  %vm823_vm7 = vcmp.eq.f32.partialorder %v822_v52, 8.507059e+37 }
 0x11b   :  { %v2442_v58 = vpop.eup %2441 }
 0x11c   :  { %v814_v61 = vmul.f32 %v2442_v58, %v812_v25  ;;  %vm819_vm4 = vweird.f32 %v2442_v58  ;;  %v2444_v20 = vpop.eup %2443  ;;  %v454_v25 = vpop.f32.mrf.mxu2 }
 0x11d   :  { %vm820_vm6 = vmor %vm818_vm5, %vm819_vm4 }
 0x11e   :  { %v815_v8 = vsub.f32 1.0, %v814_v61 }
 0x120   :  { %v816_v10 = vmul.f32 %v2442_v58, %v815_v8 }
 0x122   :  { %v817_v1 = vadd.f32 %v2442_v58, %v816_v10 }
 0x124   :  { %v821_v13 = vsel %vm820_vm6, %v2442_v58, %v817_v1  ;;  %v3117_v35 = vpop.f32.mrf.mxu2 }
 0x125   :  { %v826_v14 = vsel %vm823_vm7, %v825_v44, %v821_v13 }
 0x126   :  { %v832_v17 = vsub.f32 1.0, %v826_v14  ;;  %v834_v43 = vmul.f32 0.0, %v826_v14 }
 0x128   :  { %v833_v22 = vmul.f32 %v2444_v20, %v832_v17 }
 0x12a   :  { %v3089_v45 = vadd.f32 %v834_v43, %v833_v22 }
 0x12c   :  { %v842_v27 = vpack.c.bf16 %v3089_v45, %v3089_v45  ;;  %v3119_v39 = vpop.f32.mrf.mxu2 }
 0x12e   :  { %851 = vmatmul.bf16.vlgmr.msrb.gmra.mxu2 %v842_v27  ;;  %864 = vmatmul.bf16.vlgmr.msra.gmra.mxu3 %v842_v27 }
 0x12f   :  { %877 = vmatmul.bf16.vlgmr.msra.gmra.mxu0 %v842_v27  ;;  %1057 = vmatpush.bf16.msrb.mxu2 %v2905_v5 }
 0x130   :  { %1125 = vmatpush.bf16.msra.mxu3 %v2899_v62  ;;  %1138 = vmatpush.bf16.msra.mxu0 %v2903_v2 }
 0x133   :  { %1058 = vmatpush.bf16.msrb.mxu2 %v2914_v16 }
 0x134   :  { %1126 = vmatpush.bf16.msra.mxu3 %v2908_v12  ;;  %1139 = vmatpush.bf16.msra.mxu0 %v2911_v15  ;;  %v3121_v40 = vpop.f32.mrf.mxu2 }
 0x137   :  { %1059 = vmatpush.bf16.msrb.mxu2 %v2925_v31 }
 0x138   :  { %1127 = vmatpush.bf16.msra.mxu3 %v2919_v23  ;;  %1140 = vmatpush.bf16.msra.mxu0 %v2922_v29 }
 0x13b   :  { %1060 = vmatpush.bf16.msrb.mxu2 %v2934_v42 }
 0x13c   :  { %1128 = vmatpush.bf16.msra.mxu3 %v2928_v36  ;;  %1141 = vmatpush.bf16.msra.mxu0 %v2931_v41  ;;  %v3123_v54 = vpop.f32.mrf.mxu2 }
 0x13f   :  { %1061 = vmatpush.bf16.msrb.mxu2 %v2953_v7 }
 0x140   :  { %1129 = vmatpush.bf16.msra.mxu3 %v2937_v46  ;;  %1142 = vmatpush.bf16.msra.mxu0 %v2940_v51 }
 0x143   :  { %1062 = vmatpush.bf16.msrb.mxu2 %v2962_v19 }
 0x144   :  { %1130 = vmatpush.bf16.msra.mxu3 %v2946_v56  ;;  %1143 = vmatpush.bf16.msra.mxu0 %v2949_v59  ;;  %v3125_v55 = vpop.f32.mrf.mxu2 }
 0x147   :  { %1063 = vmatpush.bf16.msrb.mxu2 %v2971_v32 }
 0x148   :  { %1131 = vmatpush.bf16.msra.mxu3 %v2956_v9  ;;  %1144 = vmatpush.bf16.msra.mxu0 %v2959_v18 }
 0x14b   :  { %1064 = vmatpush.bf16.msrb.mxu2 %v2976_v37 }
 0x14c   :  { %1132 = vmatpush.bf16.msra.mxu3 %v2965_v26  ;;  %1145 = vmatpush.bf16.msra.mxu0 %v2969_v30  ;;  %v3127_v58 = vpop.f32.mrf.mxu2 }
 0x14d   :  { %3322 = vst [vmem:[#allocation28_spill] sm:$0xff] %v3127_v58 }
 0x1ac   :  { %v878_v61 = vpop.f32.mrf.mxu0 }
 0x1b1   :  { %v852_v4 = vpop.f32.mrf.mxu2  ;;  %v865_v8 = vpop.f32.mrf.mxu3 }
 0x1b2   :  { %v882_v33 = vadd.f32 %v852_v4, %v3051_v50  ;;  %v902_v10 = vadd.f32 %v865_v8, %v3053_v53 }
 0x1b4   :  { %v2140_v52 = vmul.f32 -1.442695, %v882_v33  ;;  %v2141_v1 = vmul.f32 -1.442695, %v902_v10  ;;  %v880_v44 = vpop.f32.mrf.mxu0 }
 0x1b5   :  { %v922_v44 = vadd.f32 %v3082_v48, %v878_v61 }
 0x1b6   :  { %2445 = vpow2.f32 %v2140_v52 }
 0x1b7   :  { %2447 = vpow2.f32 %v2141_v1 }
 0x1b9   :  { %v854_v13 = vpop.f32.mrf.mxu2  ;;  %v867_v14 = vpop.f32.mrf.mxu3 }
 0x1bc   :  { %v2446_v17 = vpop.eup %2445 }
 0x1bd   :  { %v2448_v20 = vpop.eup %2447  ;;  %v886_v22 = vadd.f32 1.0, %v2446_v17 }
 0x1be   :  { %v906_v43 = vadd.f32 1.0, %v2448_v20  ;;  %v455_v20 = vadd.f32 %v454_v25, %v3086_v28 }
 0x1bf   :  { %2449 = vrcp.f32 %v886_v22  ;;  %v898_v4 = vand.u32 2147483648, %v886_v22  ;;  %v896_v33 = vand.u32 2147483647, %v886_v22  ;;  %vm892_vm9 = vweird.f32 %v886_v22 }
 0x1c0   :  { %2451 = vrcp.f32 %v906_v43  ;;  %v918_v63 = vand.u32 2147483648, %v906_v43  ;;  %vm912_vm13 = vweird.f32 %v906_v43 }
 0x1c1   :  { %v899_v1 = vor.u32 1.1754944e-38, %v898_v4  ;;  %vm897_vm11 = vcmp.eq.f32.partialorder %v896_v33, 8.507059e+37 }
 0x1c5   :  { %v2450_v27 = vpop.eup %2449 }
 0x1c6   :  { %v2452_v47 = vpop.eup %2451  ;;  %v888_v58 = vmul.f32 %v2450_v27, %v886_v22  ;;  %vm893_vm8 = vweird.f32 %v2450_v27 }
 0x1c7   :  { %v908_v49 = vmul.f32 %v2452_v47, %v906_v43  ;;  %vm894_vm10 = vmor %vm892_vm9, %vm893_vm8  ;;  %vm913_vm12 = vweird.f32 %v2452_v47 }
 0x1c8   :  { %v889_v50 = vsub.f32 1.0, %v888_v58  ;;  %vm914_vm14 = vmor %vm912_vm13, %vm913_vm12 }
 0x1c9   :  { %v909_v53 = vsub.f32 1.0, %v908_v49  ;;  %v916_v49 = vand.u32 2147483647, %v906_v43 }
 0x1ca   :  { %v890_v8 = vmul.f32 %v2450_v27, %v889_v50 }
 0x1cb   :  { %v910_v10 = vmul.f32 %v2452_v47, %v909_v53  ;;  %vm917_vm15 = vcmp.eq.f32.partialorder %v916_v49, 8.507059e+37 }
 0x1cc   :  { %v891_v52 = vadd.f32 %v2450_v27, %v890_v8  ;;  %v919_v8 = vor.u32 1.1754944e-38, %v918_v63 }
 0x1cd   :  { %v911_v17 = vadd.f32 %v2452_v47, %v910_v10 }
 0x1ce   :  { %v895_v13 = vsel %vm894_vm10, %v2450_v27, %v891_v52 }
 0x1cf   :  { %v900_v14 = vsel %vm897_vm11, %v899_v1, %v895_v13  ;;  %v915_v53 = vsel %vm914_vm14, %v2452_v47, %v911_v17 }
 0x1d0   :  { %v923_v58 = vmul.f32 %v922_v44, %v900_v14  ;;  %v920_v22 = vsel %vm917_vm15, %v919_v8, %v915_v53 }
 0x1d1   :  { %v926_v4 = vsub.f32 1.0, %v920_v22  ;;  %v928_v33 = vmul.f32 %v920_v22, %v3089_v45 }
 0x1d2   :  { %v924_v50 = vadd.f32 %v923_v58, %v455_v20 }
 0x1d4   :  { %2453 = vtanh.f32 %v924_v50 }
 0x1da   :  { %v2454_v61 = vpop.eup %2453 }
 0x1db   :  { %v927_v27 = vmul.f32 %v2454_v61, %v926_v4 }
 0x1dd   :  { %v3134_v52 = vadd.f32 %v928_v33, %v927_v27 }
 0x1df   :  { %v936_v25 = vpack.c.bf16 %v3134_v52, %v3134_v52 }
 0x1e1   :  { %945 = vmatmul.bf16.vlgmr.msra.gmra.mxu1 %v936_v25  ;;  %958 = vmatmul.bf16.vlgmr.msra.gmra.mxu2 %v936_v25 }
 0x1e2   :  { %971 = vmatmul.bf16.vlgmr.msrb.gmra.mxu3 %v936_v25  ;;  %1151 = vmatpush.bf16.msra.mxu1 %v2905_v5 }
 0x1e3   :  { %1219 = vmatpush.bf16.msra.mxu2 %v2899_v62  ;;  %1232 = vmatpush.bf16.msrb.mxu3 %v2903_v2 }
 0x1e6   :  { %1152 = vmatpush.bf16.msra.mxu1 %v2914_v16 }
 0x1e7   :  { %1220 = vmatpush.bf16.msra.mxu2 %v2908_v12  ;;  %1233 = vmatpush.bf16.msrb.mxu3 %v2911_v15 }
 0x1ea   :  { %1153 = vmatpush.bf16.msra.mxu1 %v2925_v31 }
 0x1eb   :  { %1221 = vmatpush.bf16.msra.mxu2 %v2919_v23  ;;  %1234 = vmatpush.bf16.msrb.mxu3 %v2922_v29 }
 0x1ee   :  { %1154 = vmatpush.bf16.msra.mxu1 %v2934_v42 }
 0x1ef   :  { %1222 = vmatpush.bf16.msra.mxu2 %v2928_v36  ;;  %1235 = vmatpush.bf16.msrb.mxu3 %v2931_v41 }
 0x1f2   :  { %1155 = vmatpush.bf16.msra.mxu1 %v2953_v7 }
 0x1f3   :  { %1223 = vmatpush.bf16.msra.mxu2 %v2937_v46  ;;  %1236 = vmatpush.bf16.msrb.mxu3 %v2940_v51 }
 0x1f6   :  { %1156 = vmatpush.bf16.msra.mxu1 %v2962_v19 }
 0x1f7   :  { %1224 = vmatpush.bf16.msra.mxu2 %v2946_v56  ;;  %1237 = vmatpush.bf16.msrb.mxu3 %v2949_v59 }
 0x1fa   :  { %1157 = vmatpush.bf16.msra.mxu1 %v2971_v32 }
 0x1fb   :  { %1225 = vmatpush.bf16.msra.mxu2 %v2956_v9  ;;  %1238 = vmatpush.bf16.msrb.mxu3 %v2959_v18 }
 0x1fe   :  { %1158 = vmatpush.bf16.msra.mxu1 %v2976_v37 }
 0x1ff   :  { %1226 = vmatpush.bf16.msra.mxu2 %v2965_v26  ;;  %1239 = vmatpush.bf16.msrb.mxu3 %v2969_v30 }
 0x25e   :  { %v946_v47 = vpop.f32.mrf.mxu1 }
 0x25f   :  { %v976_v63 = vadd.f32 %v946_v47, %v3055_v57 }
 0x261   :  { %v2142_v45 = vmul.f32 -1.442695, %v976_v63 }
 0x263   :  { %2455 = vpow2.f32 %v2142_v45 }
 0x264   :  { %v959_v43 = vpop.f32.mrf.mxu2 }
 0x265   :  { %v996_v10 = vadd.f32 %v959_v43, %v3057_v60  ;;  %v972_v1 = vpop.f32.mrf.mxu3  ;;  %v458_v43 = vadd.f32 %v3117_v35, %v3086_v28 }
 0x266   :  { %v948_v44 = vpop.f32.mrf.mxu1  ;;  %v1016_v45 = vadd.f32 %v3082_v48, %v972_v1 }
 0x267   :  { %v2143_v13 = vmul.f32 -1.442695, %v996_v10 }
 0x269   :  { %v2456_v14 = vpop.eup %2455  ;;  %2457 = vpow2.f32 %v2143_v13 }
 0x26a   :  { %v980_v17 = vadd.f32 1.0, %v2456_v14 }
 0x26c   :  { %2459 = vrcp.f32 %v980_v17  ;;  %v961_v20 = vpop.f32.mrf.mxu2  ;;  %v992_v22 = vand.u32 2147483648, %v980_v17  ;;  %v990_v61 = vand.u32 2147483647, %v980_v17  ;;  %vm986_vm1 = vweird.f32 %v980_v17 }
 0x26d   :  { %v974_v58 = vpop.f32.mrf.mxu3 }
 0x26e   :  { %v993_v25 = vor.u32 1.1754944e-38, %v992_v22  ;;  %vm991_vm3 = vcmp.eq.f32.partialorder %v990_v61, 8.507059e+37 }
 0x26f   :  { %v2458_v49 = vpop.eup %2457 }
 0x270   :  { %v1000_v50 = vadd.f32 1.0, %v2458_v49 }
 0x272   :  { %v2460_v53 = vpop.eup %2459  ;;  %2461 = vrcp.f32 %v1000_v50  ;;  %v1012_v13 = vand.u32 2147483648, %v1000_v50  ;;  %v1010_v20 = vand.u32 2147483647, %v1000_v50  ;;  %vm1006_vm5 = vweird.f32 %v1000_v50 }
 0x273   :  { %v982_v8 = vmul.f32 %v2460_v53, %v980_v17  ;;  %vm987_vm0 = vweird.f32 %v2460_v53 }
 0x274   :  { %vm988_vm2 = vmor %vm986_vm1, %vm987_vm0  ;;  %v1013_v17 = vor.u32 1.1754944e-38, %v1012_v13  ;;  %vm1011_vm7 = vcmp.eq.f32.partialorder %v1010_v20, 8.507059e+37 }
 0x275   :  { %v983_v57 = vsub.f32 1.0, %v982_v8 }
 0x277   :  { %v984_v4 = vmul.f32 %v2460_v53, %v983_v57 }
 0x278   :  { %v2462_v60 = vpop.eup %2461 }
 0x279   :  { %v1002_v27 = vmul.f32 %v2462_v60, %v1000_v50  ;;  %v985_v33 = vadd.f32 %v2460_v53, %v984_v4  ;;  %vm1007_vm4 = vweird.f32 %v2462_v60 }
 0x27a   :  { %vm1008_vm6 = vmor %vm1006_vm5, %vm1007_vm4 }
 0x27b   :  { %v1003_v47 = vsub.f32 1.0, %v1002_v27  ;;  %v989_v63 = vsel %vm988_vm2, %v2460_v53, %v985_v33 }
 0x27c   :  { %v994_v10 = vsel %vm991_vm3, %v993_v25, %v989_v63 }
 0x27d   :  { %v1004_v44 = vmul.f32 %v2462_v60, %v1003_v47  ;;  %v1017_v14 = vmul.f32 %v1016_v45, %v994_v10 }
 0x27f   :  { %v1018_v58 = vadd.f32 %v1017_v14, %v458_v43  ;;  %v1005_v49 = vadd.f32 %v2462_v60, %v1004_v44 }
 0x281   :  { %2463 = vtanh.f32 %v1018_v58  ;;  %v1009_v8 = vsel %vm1008_vm6, %v2462_v60, %v1005_v49 }
 0x282   :  { %v1014_v53 = vsel %vm1011_vm7, %v1013_v17, %v1009_v8 }
 0x283   :  { %v1020_v57 = vsub.f32 1.0, %v1014_v53  ;;  %v1022_v35 = vmul.f32 %v1014_v53, %v3134_v52 }
 0x287   :  { %v2464_v1 = vpop.eup %2463 }
 0x288   :  { %v1021_v22 = vmul.f32 %v2464_v1, %v1020_v57 }
 0x28a   :  { %v3168_v4 = vadd.f32 %v1022_v35, %v1021_v22 }
 0x28c   :  { %v1030_v61 = vpack.c.bf16 %v3168_v4, %v3168_v4 }
 0x28e   :  { %1039 = vmatmul.bf16.vlgmr.msrb.gmra.mxu0 %v1030_v61  ;;  %1052 = vmatmul.bf16.vlgmr.msrb.gmra.mxu1 %v1030_v61 }
 0x28f   :  { %1065 = vmatmul.bf16.vlgmr.msrb.gmra.mxu2 %v1030_v61  ;;  %1245 = vmatpush.bf16.msrb.mxu0 %v2905_v5 }
 0x290   :  { %1313 = vmatpush.bf16.msrb.mxu1 %v2899_v62  ;;  %1326 = vmatpush.bf16.msrb.mxu2 %v2903_v2 }
 0x293   :  { %1246 = vmatpush.bf16.msrb.mxu0 %v2914_v16 }
 0x294   :  { %1314 = vmatpush.bf16.msrb.mxu1 %v2908_v12  ;;  %1327 = vmatpush.bf16.msrb.mxu2 %v2911_v15 }
 0x297   :  { %1247 = vmatpush.bf16.msrb.mxu0 %v2925_v31 }
 0x298   :  { %1315 = vmatpush.bf16.msrb.mxu1 %v2919_v23  ;;  %1328 = vmatpush.bf16.msrb.mxu2 %v2922_v29 }
 0x29b   :  { %1248 = vmatpush.bf16.msrb.mxu0 %v2934_v42 }
 0x29c   :  { %1316 = vmatpush.bf16.msrb.mxu1 %v2928_v36  ;;  %1329 = vmatpush.bf16.msrb.mxu2 %v2931_v41 }
 0x29f   :  { %1249 = vmatpush.bf16.msrb.mxu0 %v2953_v7 }
 0x2a0   :  { %1317 = vmatpush.bf16.msrb.mxu1 %v2937_v46  ;;  %1330 = vmatpush.bf16.msrb.mxu2 %v2940_v51 }
 0x2a3   :  { %1250 = vmatpush.bf16.msrb.mxu0 %v2962_v19 }
 0x2a4   :  { %1318 = vmatpush.bf16.msrb.mxu1 %v2946_v56  ;;  %1331 = vmatpush.bf16.msrb.mxu2 %v2949_v59 }
 0x2a7   :  { %1251 = vmatpush.bf16.msrb.mxu0 %v2971_v32 }
 0x2a8   :  { %1319 = vmatpush.bf16.msrb.mxu1 %v2956_v9  ;;  %1332 = vmatpush.bf16.msrb.mxu2 %v2959_v18 }
 0x2ab   :  { %1252 = vmatpush.bf16.msrb.mxu0 %v2976_v37 }
 0x2ac   :  { %1320 = vmatpush.bf16.msrb.mxu1 %v2965_v26  ;;  %1333 = vmatpush.bf16.msrb.mxu2 %v2969_v30 }
 0x30b   :  { %v1040_v52 = vpop.f32.mrf.mxu0  ;;  %v1053_v50 = vpop.f32.mrf.mxu1 }
 0x30c   :  { %v1070_v60 = vadd.f32 %v1040_v52, %v3059_v0  ;;  %v1090_v27 = vadd.f32 %v1053_v50, %v3061_v3 }
 0x30e   :  { %v2144_v33 = vmul.f32 -1.442695, %v1070_v60  ;;  %v2145_v25 = vmul.f32 -1.442695, %v1090_v27  ;;  %v460_v27 = vadd.f32 %v3119_v39, %v3086_v28 }
 0x310   :  { %2465 = vpow2.f32 %v2144_v33 }
 0x311   :  { %2467 = vpow2.f32 %v2145_v25 }
 0x312   :  { %v1066_v47 = vpop.f32.mrf.mxu2 }
 0x313   :  { %v1042_v63 = vpop.f32.mrf.mxu0  ;;  %v1055_v45 = vpop.f32.mrf.mxu1  ;;  %v1110_v52 = vadd.f32 %v3082_v48, %v1066_v47 }
 0x316   :  { %v2466_v43 = vpop.eup %2465 }
 0x317   :  { %v2468_v10 = vpop.eup %2467  ;;  %v1074_v44 = vadd.f32 1.0, %v2466_v43 }
 0x318   :  { %v1094_v13 = vadd.f32 1.0, %v2468_v10 }
 0x319   :  { %2469 = vrcp.f32 %v1074_v44  ;;  %v1086_v8 = vand.u32 2147483648, %v1074_v44  ;;  %v1084_v57 = vand.u32 2147483647, %v1074_v44  ;;  %vm1080_vm9 = vweird.f32 %v1074_v44 }
 0x31a   :  { %2471 = vrcp.f32 %v1094_v13  ;;  %v1068_v14 = vpop.f32.mrf.mxu2  ;;  %v1106_v33 = vand.u32 2147483648, %v1094_v13  ;;  %vm1100_vm13 = vweird.f32 %v1094_v13  ;;  %v1104_v63 = vand.u32 2147483647, %v1094_v13 }
 0x31b   :  { %v1087_v35 = vor.u32 1.1754944e-38, %v1086_v8  ;;  %vm1085_vm11 = vcmp.eq.f32.partialorder %v1084_v57, 8.507059e+37 }
 0x31c   :  { %v1107_v10 = vor.u32 1.1754944e-38, %v1106_v33  ;;  %vm1105_vm15 = vcmp.eq.f32.partialorder %v1104_v63, 8.507059e+37 }
 0x31f   :  { %v2470_v20 = vpop.eup %2469 }
 0x320   :  { %v2472_v58 = vpop.eup %2471  ;;  %v1076_v49 = vmul.f32 %v2470_v20, %v1074_v44  ;;  %vm1081_vm8 = vweird.f32 %v2470_v20 }
 0x321   :  { %v1096_v0 = vmul.f32 %v2472_v58, %v1094_v13  ;;  %vm1082_vm10 = vmor %vm1080_vm9, %vm1081_vm8  ;;  %vm1101_vm12 = vweird.f32 %v2472_v58 }
 0x322   :  { %v1077_v17 = vsub.f32 1.0, %v1076_v49  ;;  %vm1102_vm14 = vmor %vm1100_vm13, %vm1101_vm12 }
 0x323   :  { %v1097_v3 = vsub.f32 1.0, %v1096_v0 }
 0x324   :  { %v1078_v53 = vmul.f32 %v2470_v20, %v1077_v17 }
 0x325   :  { %v1098_v1 = vmul.f32 %v2472_v58, %v1097_v3 }
 0x326   :  { %v1079_v22 = vadd.f32 %v2470_v20, %v1078_v53 }
 0x327   :  { %v1099_v60 = vadd.f32 %v2472_v58, %v1098_v1 }
 0x328   :  { %v1083_v61 = vsel %vm1082_vm10, %v2470_v20, %v1079_v22 }
 0x329   :  { %v1088_v50 = vsel %vm1085_vm11, %v1087_v35, %v1083_v61  ;;  %v1103_v43 = vsel %vm1102_vm14, %v2472_v58, %v1099_v60 }
 0x32a   :  { %v1111_v25 = vmul.f32 %v1110_v52, %v1088_v50  ;;  %v1108_v44 = vsel %vm1105_vm15, %v1107_v10, %v1103_v43  ;;  %v463_v52 = vadd.f32 %v3121_v40, %v3086_v28 }
 0x32b   :  { %v1114_v14 = vsub.f32 1.0, %v1108_v44  ;;  %v1116_v49 = vmul.f32 %v1108_v44, %v3168_v4 }
 0x32c   :  { %v1112_v45 = vadd.f32 %v1111_v25, %v460_v27 }
 0x32e   :  { %2473 = vtanh.f32 %v1112_v45 }
 0x334   :  { %v2474_v20 = vpop.eup %2473 }
 0x335   :  { %v1115_v47 = vmul.f32 %v2474_v20, %v1114_v14 }
 0x337   :  { %v3202_v0 = vadd.f32 %v1116_v49, %v1115_v47 }
 0x339   :  { %v1124_v39 = vpack.c.bf16 %v3202_v0, %v3202_v0 }
 0x33b   :  { %1133 = vmatmul.bf16.vlgmr.msra.gmra.mxu3 %v1124_v39  ;;  %1146 = vmatmul.bf16.vlgmr.msra.gmra.mxu0 %v1124_v39 }
 0x33c   :  { %1159 = vmatmul.bf16.vlgmr.msra.gmra.mxu1 %v1124_v39  ;;  %1339 = vmatpush.bf16.msra.mxu3 %v2905_v5 }
 0x33d   :  { %1407 = vmatpush.bf16.msra.mxu0 %v2899_v62  ;;  %1420 = vmatpush.bf16.msra.mxu1 %v2903_v2 }
 0x340   :  { %1340 = vmatpush.bf16.msra.mxu3 %v2914_v16 }
 0x341   :  { %1408 = vmatpush.bf16.msra.mxu0 %v2908_v12  ;;  %1421 = vmatpush.bf16.msra.mxu1 %v2911_v15 }
 0x344   :  { %1341 = vmatpush.bf16.msra.mxu3 %v2925_v31 }
 0x345   :  { %1409 = vmatpush.bf16.msra.mxu0 %v2919_v23  ;;  %1422 = vmatpush.bf16.msra.mxu1 %v2922_v29 }
 0x348   :  { %1342 = vmatpush.bf16.msra.mxu3 %v2934_v42 }
 0x349   :  { %1410 = vmatpush.bf16.msra.mxu0 %v2928_v36  ;;  %1423 = vmatpush.bf16.msra.mxu1 %v2931_v41 }
 0x34c   :  { %1343 = vmatpush.bf16.msra.mxu3 %v2953_v7 }
 0x34d   :  { %1411 = vmatpush.bf16.msra.mxu0 %v2937_v46  ;;  %1424 = vmatpush.bf16.msra.mxu1 %v2940_v51 }
 0x350   :  { %1344 = vmatpush.bf16.msra.mxu3 %v2962_v19 }
 0x351   :  { %1412 = vmatpush.bf16.msra.mxu0 %v2946_v56  ;;  %1425 = vmatpush.bf16.msra.mxu1 %v2949_v59 }
 0x354   :  { %1345 = vmatpush.bf16.msra.mxu3 %v2971_v32 }
 0x355   :  { %1413 = vmatpush.bf16.msra.mxu0 %v2956_v9  ;;  %1426 = vmatpush.bf16.msra.mxu1 %v2959_v18 }
 0x358   :  { %1346 = vmatpush.bf16.msra.mxu3 %v2976_v37 }
 0x359   :  { %1414 = vmatpush.bf16.msra.mxu0 %v2965_v26  ;;  %1427 = vmatpush.bf16.msra.mxu1 %v2969_v30 }
 0x3b8   :  { %v1147_v62 = vpop.f32.mrf.mxu0 }
 0x3b9   :  { %v1184_v2 = vadd.f32 %v1147_v62, %v3065_v11  ;;  %v1160_v12 = vpop.f32.mrf.mxu1 }
 0x3ba   :  { %v1204_v1 = vadd.f32 %v3082_v48, %v1160_v12 }
 0x3bb   :  { %v2147_v15 = vmul.f32 -1.442695, %v1184_v2 }
 0x3bd   :  { %2475 = vpow2.f32 %v2147_v15 }
 0x3be   :  { %v1134_v23 = vpop.f32.mrf.mxu3 }
 0x3bf   :  { %v1164_v29 = vadd.f32 %v1134_v23, %v3063_v6 }
 0x3c0   :  { %v1149_v36 = vpop.f32.mrf.mxu0 }
 0x3c1   :  { %v2146_v41 = vmul.f32 -1.442695, %v1164_v29  ;;  %v1162_v46 = vpop.f32.mrf.mxu1 }
 0x3c3   :  { %v2476_v51 = vpop.eup %2475  ;;  %2477 = vpow2.f32 %v2146_v41 }
 0x3c4   :  { %v1188_v56 = vadd.f32 1.0, %v2476_v51 }
 0x3c6   :  { %v1136_v59 = vpop.f32.mrf.mxu3  ;;  %2479 = vrcp.f32 %v1188_v56  ;;  %v1200_v50 = vand.u32 2147483648, %v1188_v56  ;;  %vm1194_vm5 = vweird.f32 %v1188_v56  ;;  %v1198_v27 = vand.u32 2147483647, %v1188_v56 }
 0x3c8   :  { %v1201_v63 = vor.u32 1.1754944e-38, %v1200_v50  ;;  %vm1199_vm7 = vcmp.eq.f32.partialorder %v1198_v27, 8.507059e+37 }
 0x3c9   :  { %v2478_v9 = vpop.eup %2477 }
 0x3ca   :  { %v1168_v18 = vadd.f32 1.0, %v2478_v9 }
 0x3cc   :  { %2481 = vrcp.f32 %v1168_v18  ;;  %v2480_v26 = vpop.eup %2479  ;;  %v1180_v17 = vand.u32 2147483648, %v1168_v18  ;;  %v1178_v6 = vand.u32 2147483647, %v1168_v18  ;;  %vm1174_vm1 = vweird.f32 %v1168_v18 }
 0x3cd   :  { %v1190_v30 = vmul.f32 %v2480_v26, %v1188_v56  ;;  %vm1195_vm4 = vweird.f32 %v2480_v26 }
 0x3ce   :  { %v1181_v57 = vor.u32 1.1754944e-38, %v1180_v17  ;;  %vm1179_vm3 = vcmp.eq.f32.partialorder %v1178_v6, 8.507059e+37  ;;  %vm1196_vm6 = vmor %vm1194_vm5, %vm1195_vm4 }
 0x3cf   :  { %v1191_v13 = vsub.f32 1.0, %v1190_v30 }
 0x3d1   :  { %v1192_v8 = vmul.f32 %v2480_v26, %v1191_v13 }
 0x3d2   :  { %v2482_v11 = vpop.eup %2481 }
 0x3d3   :  { %v1170_v4 = vmul.f32 %v2482_v11, %v1168_v18  ;;  %vm1175_vm0 = vweird.f32 %v2482_v11  ;;  %v1193_v61 = vadd.f32 %v2480_v26, %v1192_v8 }
 0x3d4   :  { %vm1176_vm2 = vmor %vm1174_vm1, %vm1175_vm0 }
 0x3d5   :  { %v1171_v58 = vsub.f32 1.0, %v1170_v4  ;;  %v1197_v25 = vsel %vm1196_vm6, %v2480_v26, %v1193_v61 }
 0x3d6   :  { %v1202_v45 = vsel %vm1199_vm7, %v1201_v63, %v1197_v25 }
 0x3d7   :  { %v1172_v3 = vmul.f32 %v2482_v11, %v1171_v58  ;;  %v1208_v43 = vsub.f32 1.0, %v1202_v45  ;;  %v1210_v14 = vmul.f32 %v1202_v45, %v3202_v0 }
 0x3d9   :  { %v1173_v53 = vadd.f32 %v2482_v11, %v1172_v3 }
 0x3db   :  { %v1177_v22 = vsel %vm1176_vm2, %v2482_v11, %v1173_v53  ;;  %v465_v11 = vadd.f32 %v3123_v54, %v3086_v28 }
 0x3dc   :  { %v1182_v35 = vsel %vm1179_vm3, %v1181_v57, %v1177_v22 }
 0x3dd   :  { %v1205_v60 = vmul.f32 %v1204_v1, %v1182_v35 }
 0x3df   :  { %v1206_v33 = vadd.f32 %v1205_v60, %v463_v52 }
 0x3e1   :  { %2483 = vtanh.f32 %v1206_v33 }
 0x3e7   :  { %v2484_v10 = vpop.eup %2483 }
 0x3e8   :  { %v1209_v44 = vmul.f32 %v2484_v10, %v1208_v43 }
 0x3ea   :  { %v3236_v20 = vadd.f32 %v1210_v14, %v1209_v44 }
 0x3ec   :  { %v1218_v40 = vpack.c.bf16 %v3236_v20, %v3236_v20 }
 0x3ee   :  { %1227 = vmatmul.bf16.vlgmr.msra.gmra.mxu2 %v1218_v40  ;;  %1240 = vmatmul.bf16.vlgmr.msrb.gmra.mxu3 %v1218_v40 }
 0x3ef   :  { %1253 = vmatmul.bf16.vlgmr.msrb.gmra.mxu0 %v1218_v40  ;;  %1433 = vmatpush.bf16.msra.mxu2 %v2905_v5 }
 0x3f3   :  { %1434 = vmatpush.bf16.msra.mxu2 %v2914_v16 }
 0x3f7   :  { %1435 = vmatpush.bf16.msra.mxu2 %v2925_v31 }
 0x3fb   :  { %1436 = vmatpush.bf16.msra.mxu2 %v2934_v42 }
 0x3ff   :  { %1437 = vmatpush.bf16.msra.mxu2 %v2953_v7 }
 0x403   :  { %1438 = vmatpush.bf16.msra.mxu2 %v2962_v19 }
 0x407   :  { %1439 = vmatpush.bf16.msra.mxu2 %v2971_v32 }
 0x40b   :  { %1440 = vmatpush.bf16.msra.mxu2 %v2976_v37 }
 0x46c   :  { %v1254_v47 = vpop.f32.mrf.mxu0 }
 0x46d   :  { %v1298_v9 = vadd.f32 %v3082_v48, %v1254_v47 }
 0x471   :  { %v1228_v49 = vpop.f32.mrf.mxu2  ;;  %v1241_v0 = vpop.f32.mrf.mxu3 }
 0x472   :  { %v1258_v39 = vadd.f32 %v1228_v49, %v3067_v21  ;;  %v1278_v5 = vadd.f32 %v1241_v0, %v3069_v24 }
 0x474   :  { %v2148_v16 = vmul.f32 -1.442695, %v1258_v39  ;;  %v2149_v62 = vmul.f32 -1.442695, %v1278_v5  ;;  %v1256_v31 = vpop.f32.mrf.mxu0 }
 0x476   :  { %2485 = vpow2.f32 %v2148_v16 }
 0x477   :  { %2487 = vpow2.f32 %v2149_v62 }
 0x479   :  { %v1230_v42 = vpop.f32.mrf.mxu2  ;;  %v1243_v7 = vpop.f32.mrf.mxu3 }
 0x47c   :  { %v2486_v2 = vpop.eup %2485 }
 0x47d   :  { %v2488_v19 = vpop.eup %2487  ;;  %v1262_v12 = vadd.f32 1.0, %v2486_v2  ;;  %v468_v2 = vadd.f32 %v3125_v55, %v3086_v28 }
 0x47e   :  { %v1282_v32 = vadd.f32 1.0, %v2488_v19 }
 0x47f   :  { %2489 = vrcp.f32 %v1262_v12  ;;  %v1274_v36 = vand.u32 2147483648, %v1262_v12  ;;  %v1272_v46 = vand.u32 2147483647, %v1262_v12  ;;  %vm1268_vm9 = vweird.f32 %v1262_v12 }
 0x480   :  { %2491 = vrcp.f32 %v1282_v32  ;;  %v1294_v13 = vand.u32 2147483648, %v1282_v32  ;;  %vm1288_vm13 = vweird.f32 %v1282_v32  ;;  %v1292_v58 = vand.u32 2147483647, %v1282_v32 }
 0x481   :  { %v1275_v59 = vor.u32 1.1754944e-38, %v1274_v36  ;;  %vm1273_vm11 = vcmp.eq.f32.partialorder %v1272_v46, 8.507059e+37 }
 0x482   :  { %v1295_v6 = vor.u32 1.1754944e-38, %v1294_v13  ;;  %vm1293_vm15 = vcmp.eq.f32.partialorder %v1292_v58, 8.507059e+37  ;;  %v3324_v58 = vld [vmem:[#allocation27_spill] sm:$0xff] }
 0x485   :  { %v2490_v37 = vpop.eup %2489 }
 0x486   :  { %v2492_v15 = vpop.eup %2491  ;;  %v1264_v23 = vmul.f32 %v2490_v37, %v1262_v12  ;;  %vm1269_vm8 = vweird.f32 %v2490_v37 }
 0x487   :  { %v1284_v29 = vmul.f32 %v2492_v15, %v1282_v32  ;;  %vm1270_vm10 = vmor %vm1268_vm9, %vm1269_vm8  ;;  %vm1289_vm12 = vweird.f32 %v2492_v15 }
 0x488   :  { %v1265_v21 = vsub.f32 1.0, %v1264_v23  ;;  %vm1290_vm14 = vmor %vm1288_vm13, %vm1289_vm12 }
 0x489   :  { %v1285_v24 = vsub.f32 1.0, %v1284_v29 }
 0x48a   :  { %v1266_v41 = vmul.f32 %v2490_v37, %v1265_v21 }
 0x48b   :  { %v1286_v51 = vmul.f32 %v2492_v15, %v1285_v24 }
 0x48c   :  { %v1267_v56 = vadd.f32 %v2490_v37, %v1266_v41 }
 0x48d   :  { %v1287_v30 = vadd.f32 %v2492_v15, %v1286_v51 }
 0x48e   :  { %v1271_v18 = vsel %vm1270_vm10, %v2490_v37, %v1267_v56 }
 0x48f   :  { %v1276_v26 = vsel %vm1273_vm11, %v1275_v59, %v1271_v18  ;;  %v1291_v3 = vsel %vm1290_vm14, %v2492_v15, %v1287_v30  ;;  %v2381_v59 = vld [vmem:[#allocation12 + $0x38] sm:$0xff]  ;;  %v2379_v18 = vld [vmem:[#allocation12 + $0x28] sm:$0xff] }
 0x490   :  { %v1299_v4 = vmul.f32 %v1298_v9, %v1276_v26  ;;  %v1296_v8 = vsel %vm1293_vm15, %v1295_v6, %v1291_v3  ;;  %1563 = vmatpush.bf16.msrb.mxu3 %v2381_v59  ;;  %v2380_v9 = vld [vmem:[#allocation12 + $0x30] sm:$0xff]  ;;  %v2378_v26 = vld [vmem:[#allocation12 + $0x20] sm:$0xff]  ;;  %v2377_v3 = vld [vmem:[#allocation12 + $0x18] sm:$0xff] }
 0x491   :  { %v1302_v53 = vsub.f32 1.0, %v1296_v8  ;;  %v1304_v22 = vmul.f32 %v1296_v8, %v3236_v20 }
 0x492   :  { %v1300_v17 = vadd.f32 %v1299_v4, %v465_v11  ;;  %v3323_v4 = vld [vmem:[#allocation26_spill] sm:$0xff] }
 0x494   :  { %2493 = vtanh.f32 %v1300_v17  ;;  %1564 = vmatpush.bf16.msrb.mxu3 %v2380_v9  ;;  %v2515_v9 = vld [vmem:[%s3309_s5] ss:$0 sm:$0xff] }
 0x498   :  { %1565 = vmatpush.bf16.msrb.mxu3 %v2379_v18 }
 0x49a   :  { %v2494_v57 = vpop.eup %2493 }
 0x49b   :  { %v1303_v1 = vmul.f32 %v2494_v57, %v1302_v53  ;;  %v2376_v53 = vld [vmem:[#allocation12 + $0x10] sm:$0xff] }
 0x49c   :  { %1566 = vmatpush.bf16.msrb.mxu3 %v2378_v26  ;;  %v2388_v26 = vld [vmem:[#allocation15 + $0x34] sm:$0xf] }
 0x49d   :  { %v1305_v35 = vadd.f32 %v1304_v22, %v1303_v1  ;;  %v2375_v1 = vld [vmem:[#allocation12 + $0x8] sm:$0xff] }
 0x49f   :  { %v1312_v61 = vpack.c.bf16 %v1305_v35, %v1305_v35 }
 0x4a0   :  { %1567 = vmatpush.bf16.msrb.mxu3 %v2377_v3 }
 0x4a1   :  { %1321 = vmatmul.bf16.vlgmr.msrb.gmra.mxu1 %v1312_v61  ;;  %1334 = vmatmul.bf16.vlgmr.msrb.gmra.mxu2 %v1312_v61 }
 0x4a2   :  { %1347 = vmatmul.bf16.vlgmr.msra.gmra.mxu3 %v1312_v61 }
 0x4a4   :  { %1568 = vmatpush.bf16.msrb.mxu3 %v2376_v53 }
 0x4a8   :  { %1569 = vmatpush.bf16.msrb.mxu3 %v2375_v1  ;;  %v2387_v1 = vld [vmem:[#allocation15 + $0x24] sm:$0xf0] }
 0x51e   :  { %v1322_v54 = vpop.f32.mrf.mxu1 }
 0x51f   :  { %v1352_v52 = vadd.f32 %v1322_v54, %v3071_v34  ;;  %v2374_v54 = vld [vmem:[#allocation12] sm:$0xff] }
 0x520   :  { %1570 = vmatpush.bf16.msrb.mxu3 %v2374_v54 }
 0x521   :  { %v2150_v50 = vmul.f32 -1.442695, %v1352_v52 }
 0x523   :  { %2495 = vpow2.f32 %v2150_v50 }
 0x524   :  { %v1335_v60 = vpop.f32.mrf.mxu2 }
 0x525   :  { %v1372_v27 = vadd.f32 %v1335_v60, %v3073_v38  ;;  %v1348_v33 = vpop.f32.mrf.mxu3 }
 0x526   :  { %v1324_v25 = vpop.f32.mrf.mxu1  ;;  %v1392_v7 = vadd.f32 %v3082_v48, %v1348_v33  ;;  %v2244_v33 = vld [vmem:[#allocation15 + $0x70] sm:$0xf] }
 0x527   :  { %v2151_v63 = vmul.f32 -1.442695, %v1372_v27  ;;  %v2397_v25 = vld [vmem:[#allocation15 + $0x74] sm:$0xf0] }
 0x529   :  { %v2496_v45 = vpop.eup %2495  ;;  %2497 = vpow2.f32 %v2151_v63  ;;  %v2245_v63 = vor.u32 %v2397_v25, %v2244_v33 }
 0x52a   :  { %v1356_v43 = vadd.f32 1.0, %v2496_v45  ;;  %v2396_v45 = vld [vmem:[#allocation15 + $0x74] sm:$0xf] }
 0x52b   :  { %1681 = vmatpush.bf16.msrb.mxu0 %v2245_v63 }
 0x52c   :  { %2499 = vrcp.f32 %v1356_v43  ;;  %v1337_v10 = vpop.f32.mrf.mxu2  ;;  %v1368_v49 = vand.u32 2147483648, %v1356_v43  ;;  %v1366_v39 = vand.u32 2147483647, %v1356_v43  ;;  %vm1362_vm1 = vweird.f32 %v1356_v43 }
 0x52d   :  { %v1350_v44 = vpop.f32.mrf.mxu3 }
 0x52e   :  { %v1369_v62 = vor.u32 1.1754944e-38, %v1368_v49  ;;  %vm1367_vm3 = vcmp.eq.f32.partialorder %v1366_v39, 8.507059e+37  ;;  %v2236_v44 = vld [vmem:[#allocation15 + $0x60] sm:$0xf]  ;;  %v2393_v39 = vld [vmem:[#allocation15 + $0x54] sm:$0xf0] }
 0x52f   :  { %v2498_v14 = vpop.eup %2497 }
 0x530   :  { %v1376_v20 = vadd.f32 1.0, %v2498_v14  ;;  %v2395_v14 = vld [vmem:[#allocation15 + $0x64] sm:$0xf0] }
 0x532   :  { %v2500_v40 = vpop.eup %2499  ;;  %2501 = vrcp.f32 %v1376_v20  ;;  %v1388_v32 = vand.u32 2147483648, %v1376_v20  ;;  %v1386_v15 = vand.u32 2147483647, %v1376_v20  ;;  %vm1382_vm5 = vweird.f32 %v1376_v20 }
 0x533   :  { %v1358_v47 = vmul.f32 %v2500_v40, %v1356_v43  ;;  %vm1363_vm0 = vweird.f32 %v2500_v40  ;;  %v2246_v43 = vld [vmem:[#allocation15 + $0x78] sm:$0xf0] }
 0x534   :  { %vm1364_vm2 = vmor %vm1362_vm1, %vm1363_vm0  ;;  %v1389_v21 = vor.u32 1.1754944e-38, %v1388_v32  ;;  %vm1387_vm7 = vcmp.eq.f32.partialorder %v1386_v15, 8.507059e+37  ;;  %v2249_v10 = vor.u32 %v2396_v45, %v2246_v43  ;;  %v2220_v32 = vld [vmem:[#allocation15 + $0x40] sm:$0xf] }
 0x535   :  { %v1359_v34 = vsub.f32 1.0, %v1358_v47  ;;  %v2238_v47 = vld [vmem:[#allocation15 + $0x68] sm:$0xf0] }
 0x536   :  { %1694 = vmatpush.bf16.msrb.mxu1 %v2249_v10  ;;  %v2196_v10 = vld [vmem:[#allocation15 + $0x10] sm:$0xf] }
 0x537   :  { %v1360_v0 = vmul.f32 %v2500_v40, %v1359_v34 }
 0x538   :  { %v2502_v38 = vpop.eup %2501 }
 0x539   :  { %v1378_v5 = vmul.f32 %v2502_v38, %v1376_v20  ;;  %v1361_v16 = vadd.f32 %v2500_v40, %v1360_v0  ;;  %vm1383_vm4 = vweird.f32 %v2502_v38  ;;  %v2394_v20 = vld [vmem:[#allocation15 + $0x64] sm:$0xf]  ;;  %v2228_v0 = vld [vmem:[#allocation15 + $0x50] sm:$0xf] }
 0x53a   :  { %vm1384_vm6 = vmor %vm1382_vm5, %vm1383_vm4  ;;  %v2241_v49 = vor.u32 %v2394_v20, %v2238_v47 }
 0x53b   :  { %v1379_v31 = vsub.f32 1.0, %v1378_v5  ;;  %v1365_v42 = vsel %vm1364_vm2, %v2500_v40, %v1361_v16  ;;  %v2237_v40 = vor.u32 %v2395_v14, %v2236_v44  ;;  %v2392_v16 = vld [vmem:[#allocation15 + $0x54] sm:$0xf]  ;;  %v2385_v44 = vld [vmem:[#allocation15 + $0x14] sm:$0xf0] }
 0x53c   :  { %v1370_v19 = vsel %vm1367_vm3, %v1369_v62, %v1365_v42  ;;  %v2230_v62 = vld [vmem:[#allocation15 + $0x58] sm:$0xf0]  ;;  %1695 = vmatpush.bf16.msrb.mxu1 %v2241_v49  ;;  %v2384_v14 = vld [vmem:[#allocation15 + $0x14] sm:$0xf]  ;;  %v2197_v20 = vor.u32 %v2385_v44, %v2196_v10  ;;  %v2383_v49 = vld [vmem:[#allocation15 + $0x4] sm:$0xf0] }
 0x53d   :  { %v1380_v12 = vmul.f32 %v2502_v38, %v1379_v31  ;;  %v1393_v37 = vmul.f32 %v1392_v7, %v1370_v19  ;;  %1682 = vmatpush.bf16.msrb.mxu0 %v2237_v40  ;;  %v2229_v7 = vor.u32 %v2393_v39, %v2228_v0  ;;  %v2198_v40 = vld [vmem:[#allocation15 + $0x18] sm:$0xf0]  ;;  %v2382_v0 = vld [vmem:[#allocation15 + $0x4] sm:$0xf] }
 0x53e   :  { %v2201_v47 = vor.u32 %v2384_v14, %v2198_v40 }
 0x53f   :  { %v1394_v23 = vadd.f32 %v1393_v37, %v468_v2  ;;  %v1381_v29 = vadd.f32 %v2502_v38, %v1380_v12  ;;  %v2233_v12 = vor.u32 %v2392_v16, %v2230_v62  ;;  %v2391_v37 = vld [vmem:[#allocation15 + $0x44] sm:$0xf0]  ;;  %v2413_v16 = vld [vmem:[#allocation17 + $0x78] sm:$0xff]  ;;  %v2404_v62 = vld [vmem:[#allocation17 + $0x30] sm:$0xff] }
 0x540   :  { %1856 = vmatpush.bf16.msra.mxu3 %v2413_v16 }
 0x541   :  { %2503 = vtanh.f32 %v1394_v23  ;;  %v1385_v36 = vsel %vm1384_vm6, %v2502_v38, %v1381_v29  ;;  %v2390_v29 = vld [vmem:[#allocation15 + $0x44] sm:$0xf]  ;;  %1683 = vmatpush.bf16.msrb.mxu0 %v2229_v7  ;;  %1696 = vmatpush.bf16.msrb.mxu1 %v2233_v12  ;;  %v2411_v7 = vld [vmem:[#allocation17 + $0x68] sm:$0xff]  ;;  %v2401_v12 = vld [vmem:[#allocation17 + $0x18] sm:$0xff] }
 0x542   :  { %v1390_v24 = vsel %vm1387_vm7, %v1389_v21, %v1385_v36  ;;  %v2222_v21 = vld [vmem:[#allocation15 + $0x48] sm:$0xf0] }
 0x543   :  { %v1396_v41 = vsub.f32 1.0, %v1390_v24  ;;  %v1398_v51 = vmul.f32 %v1390_v24, %v1305_v35 }
 0x547   :  { %v2504_v48 = vpop.eup %2503 }
 0x548   :  { %v1397_v46 = vmul.f32 %v2504_v48, %v1396_v41  ;;  %v2221_v41 = vor.u32 %v2391_v37, %v2220_v32  ;;  %v2409_v32 = vld [vmem:[#allocation17 + $0x58] sm:$0xff] }
 0x549   :  { %v2431_v37 = vld [vmem:[%s3313_s9] ss:$0 sm:$0xff] }
 0x54a   :  { %v3259_v55 = vadd.f32 %v1398_v51, %v1397_v46  ;;  %v2225_v46 = vor.u32 %v2390_v29, %v2222_v21  ;;  %v2212_v51 = vld [vmem:[#allocation15 + $0x30] sm:$0xf]  ;;  %1684 = vmatpush.bf16.msrb.mxu0 %v2221_v41  ;;  %v2433_v29 = vld [vmem:[%s3311_s7] ss:$0 sm:$0xff]  ;;  %v3326_v21 = vld [vmem:[#allocation25_spill] sm:$0xff] }
 0x54c   :  { %v1406_v56 = vpack.c.bf16 %v3259_v55, %v3259_v55  ;;  %1697 = vmatpush.bf16.msrb.mxu1 %v2225_v46 }
 0x54e   :  { %1415 = vmatmul.bf16.vlgmr.msra.gmra.mxu0 %v1406_v56  ;;  %1428 = vmatmul.bf16.vlgmr.msra.gmra.mxu1 %v1406_v56 }
 0x54f   :  { %1441 = vmatmul.bf16.vlgmr.msra.gmra.mxu2 %v1406_v56  ;;  %v2389_v56 = vld [vmem:[#allocation15 + $0x34] sm:$0xf0] }
 0x5cb   :  { %v1416_v30 = vpop.f32.mrf.mxu0  ;;  %v1429_v11 = vpop.f32.mrf.mxu1 }
 0x5cc   :  { %v1446_v13 = vadd.f32 %v1416_v30, %v3323_v4  ;;  %v1466_v17 = vadd.f32 %v1429_v11, %v3324_v58  ;;  %v2214_v30 = vld [vmem:[#allocation15 + $0x38] sm:$0xf0] }
 0x5cd   :  { %v2217_v53 = vor.u32 %v2388_v26, %v2214_v30  ;;  %v2398_v26 = vld [vmem:[#allocation17] sm:$0xff] }
 0x5ce   :  { %v2152_v6 = vmul.f32 -1.442695, %v1446_v13  ;;  %v2153_v8 = vmul.f32 -1.442695, %v1466_v17  ;;  %v3325_v13 = vld [vmem:[#allocation28_spill] sm:$0xff] }
 0x5cf   :  { %v470_v58 = vadd.f32 %v3325_v13, %v3086_v28  ;;  %1698 = vmatpush.bf16.msrb.mxu1 %v2217_v53  ;;  %v2406_v30 = vld [vmem:[#allocation17 + $0x40] sm:$0xff] }
 0x5d0   :  { %2505 = vpow2.f32 %v2152_v6  ;;  %v2213_v6 = vor.u32 %v2389_v56, %v2212_v51 }
 0x5d1   :  { %2507 = vpow2.f32 %v2153_v8 }
 0x5d2   :  { %v3265_v57 = vpop.f32.mrf.mxu2  ;;  %1685 = vmatpush.bf16.msrb.mxu0 %v2213_v6 }
 0x5d3   :  { %v1418_v22 = vpop.f32.mrf.mxu0  ;;  %v1431_v35 = vpop.f32.mrf.mxu1  ;;  %v1486_v18 = vadd.f32 %v2515_v9, %v3265_v57  ;;  %v2204_v57 = vld [vmem:[#allocation15 + $0x20] sm:$0xf]  ;;  %v2399_v9 = vld [vmem:[#allocation17 + $0x8] sm:$0xff] }
 0x5d4   :  { %v2386_v35 = vld [vmem:[#allocation15 + $0x24] sm:$0xf] }
 0x5d6   :  { %v2506_v61 = vpop.eup %2505 }
 0x5d7   :  { %v2508_v52 = vpop.eup %2507  ;;  %v1450_v50 = vadd.f32 1.0, %v2506_v61  ;;  %v2206_v61 = vld [vmem:[#allocation15 + $0x28] sm:$0xf0] }
 0x5d8   :  { %v3267_v60 = vadd.f32 1.0, %v2508_v52  ;;  %v2205_v52 = vor.u32 %v2387_v1, %v2204_v57 }
 0x5d9   :  { %2509 = vrcp.f32 %v1450_v50  ;;  %v1462_v19 = vand.u32 2147483648, %v1450_v50  ;;  %v1460_v23 = vand.u32 2147483647, %v1450_v50  ;;  %vm1456_vm9 = vweird.f32 %v1450_v50 }
 0x5da   :  { %2511 = vrcp.f32 %v3267_v60  ;;  %v1444_v27 = vpop.f32.mrf.mxu2  ;;  %v1482_v17 = vand.u32 2147483648, %v3267_v60  ;;  %vm1476_vm13 = vweird.f32 %v3267_v60  ;;  %v1480_v8 = vand.u32 2147483647, %v3267_v60  ;;  %1686 = vmatpush.bf16.msrb.mxu0 %v2205_v52 }
 0x5db   :  { %v1463_v48 = vor.u32 1.1754944e-38, %v1462_v19  ;;  %vm1461_vm11 = vcmp.eq.f32.partialorder %v1460_v23, 8.507059e+37  ;;  %v2410_v19 = vld [vmem:[#allocation17 + $0x60] sm:$0xff]  ;;  %v2408_v23 = vld [vmem:[#allocation17 + $0x50] sm:$0xff] }
 0x5dc   :  { %v1483_v28 = vor.u32 1.1754944e-38, %v1482_v17  ;;  %vm1481_vm15 = vcmp.eq.f32.partialorder %v1480_v8, 8.507059e+37 }
 0x5de   :  { %1687 = vmatpush.bf16.msrb.mxu0 %v2197_v20 }
 0x5df   :  { %v2510_v34 = vpop.eup %2509 }
 0x5e0   :  { %v3270_v38 = vpop.eup %2511  ;;  %v1452_v5 = vmul.f32 %v2510_v34, %v1450_v50  ;;  %vm1457_vm8 = vweird.f32 %v2510_v34  ;;  %v2209_v50 = vor.u32 %v2386_v35, %v2206_v61  ;;  %v2434_v61 = vld [vmem:[%s3317_s13] ss:$0 sm:$0xff] }
 0x5e1   :  { %v1472_v31 = vmul.f32 %v3270_v38, %v3267_v60  ;;  %vm1458_vm10 = vmor %vm1456_vm9, %vm1457_vm8  ;;  %vm1477_vm12 = vweird.f32 %v3270_v38 }
 0x5e2   :  { %v1453_v42 = vsub.f32 1.0, %v1452_v5  ;;  %vm1478_vm14 = vmor %vm1476_vm13, %vm1477_vm12  ;;  %1699 = vmatpush.bf16.msrb.mxu1 %v2209_v50 }
 0x5e3   :  { %v1473_v2 = vsub.f32 1.0, %v1472_v31  ;;  %v2412_v31 = vld [vmem:[#allocation17 + $0x70] sm:$0xff] }
 0x5e4   :  { %v1454_v15 = vmul.f32 %v2510_v34, %v1453_v42  ;;  %1857 = vmatpush.bf16.msra.mxu3 %v2412_v31  ;;  %v2403_v42 = vld [vmem:[#allocation17 + $0x28] sm:$0xff] }
 0x5e5   :  { %v1474_v36 = vmul.f32 %v3270_v38, %v1473_v2  ;;  %v2402_v2 = vld [vmem:[#allocation17 + $0x20] sm:$0xff] }
 0x5e6   :  { %v1455_v24 = vadd.f32 %v2510_v34, %v1454_v15  ;;  %1700 = vmatpush.bf16.msrb.mxu1 %v2201_v47  ;;  %v2400_v15 = vld [vmem:[#allocation17 + $0x10] sm:$0xff] }
 0x5e7   :  { %v1475_v4 = vadd.f32 %v3270_v38, %v1474_v36  ;;  %v575_v36 = vadd.f32 %v2431_v37, %v3326_v21 }
 0x5e8   :  { %v1459_v59 = vsel %vm1458_vm10, %v2510_v34, %v1455_v24  ;;  %v2188_v34 = vld [vmem:[#allocation15] sm:$0xf]  ;;  %1858 = vmatpush.bf16.msra.mxu3 %v2411_v7 }
 0x5e9   :  { %v1464_v11 = vsel %vm1461_vm11, %v1463_v48, %v1459_v59  ;;  %v1479_v54 = vsel %vm1478_vm14, %v3270_v38, %v1475_v4  ;;  %v2189_v39 = vor.u32 %v2383_v49, %v2188_v34  ;;  %v2190_v38 = vld [vmem:[#allocation15 + $0x8] sm:$0xf0]  ;;  %v578_v48 = vmax.f32 %v575_v36, 0.0 }
 0x5ea   :  { %v1487_v3 = vmul.f32 %v1486_v18, %v1464_v11  ;;  %v1484_v27 = vsel %vm1481_vm15, %v1483_v28, %v1479_v54  ;;  %v2193_v5 = vor.u32 %v2382_v0, %v2190_v38  ;;  %v2407_v18 = vld [vmem:[#allocation17 + $0x48] sm:$0xff]  ;;  %v1595_v11 = vld [vmem:[%s3315_s11] sm:$0x3]  ;;  %s2784_s11 = smov [#allocation18]  }
 0x5eb   :  { %v1490_v60 = vsub.f32 1.0, %v1484_v27  ;;  %v1492_v63 = vmul.f32 %v1484_v27, %v3259_v55  ;;  %1688 = vmatpush.bf16.msrb.mxu0 %v2189_v39  ;;  %v2405_v55 = vld [vmem:[#allocation17 + $0x38] sm:$0xff]  ;;  %v1597_v4 = vperm.slane %v1595_v11, 0  ;;  %v1598_v13 = vperm.slane %v1595_v11, 1  ;;  %s1875_s27 = sshll.u32 %s2784_s11, 4  ;;  %s1876_s27 = int_to_ptr.vmem [resolvable:$true] %s1875_s27 }
 0x5ec   :  { %v1488_v22 = vadd.f32 %v1487_v3, %v470_v58  ;;  %1701 = vmatpush.bf16.msrb.mxu1 %v2193_v5  ;;  %1843 = vmatpush.bf16.msrb.mxu2 %v2405_v55 }
 0x5ed   :  { %1859 = vmatpush.bf16.msra.mxu3 %v2410_v19 }
 0x5ee   :  { %2513 = vtanh.f32 %v1488_v22 }
 0x5f0   :  { %1844 = vmatpush.bf16.msrb.mxu2 %v2404_v62 }
 0x5f1   :  { %1860 = vmatpush.bf16.msra.mxu3 %v2409_v32 }
 0x5f4   :  { %v2514_v33 = vpop.eup %2513  ;;  %1845 = vmatpush.bf16.msrb.mxu2 %v2403_v42 }
 0x5f5   :  { %v1491_v25 = vmul.f32 %v2514_v33, %v1490_v60  ;;  %1861 = vmatpush.bf16.msra.mxu3 %v2408_v23 }
 0x5f7   :  { %v1493_v45 = vadd.f32 %v1492_v63, %v1491_v25 }
 0x5f8   :  { %1846 = vmatpush.bf16.msrb.mxu2 %v2402_v2 }
 0x5f9   :  { %v1494_v43 = vpack.c.bf16 %v1493_v45, %v1493_v45  ;;  %1862 = vmatpush.bf16.msra.mxu3 %v2407_v18 }
 0x5fb   :  { %1571 = vmatmul.bf16.vlgmr.msrb.gmra.mxu3 %v1494_v43 }
 0x5fc   :  { %1847 = vmatpush.bf16.msrb.mxu2 %v2401_v12 }
 0x5fd   :  { %1863 = vmatpush.bf16.msra.mxu3 %v2406_v30 }
 0x600   :  { %1848 = vmatpush.bf16.msrb.mxu2 %v2400_v15 }
 0x604   :  { %1849 = vmatpush.bf16.msrb.mxu2 %v2399_v9 }
 0x608   :  { %1850 = vmatpush.bf16.msrb.mxu2 %v2398_v26 }
 0x67e   :  { %v1572_v24 = vpop.f32.mrf.mxu3 }
 0x67f   :  { %v1573_v41 = vadd.f32 %v2433_v29, %v1572_v24 }
 0x681   :  { %v1576_v46 = vmax.f32 %v1573_v41, 0.0 }
 0x683   :  { %v1577_v51 = vmul.f32 %v1576_v46, %v578_v48 }
 0x685   :  { %v1578_v56 = vpack.c.bf16 %v1577_v51, %v1577_v51 }
 0x686   :  { %v1574_v59 = vpop.f32.mrf.mxu3 }
 0x687   :  { %1689 = vmatmul.bf16.vlgmr.msrb.gmra.mxu0 %v1578_v56  ;;  %1702 = vmatmul.bf16.vlgmr.msrb.gmra.mxu1 %v1578_v56 }
 0x704   :  { %v1690_v58 = vpop.f32.mrf.mxu0  ;;  %v1703_v17 = vpop.f32.mrf.mxu1 }
 0x705   :  { %v1691_v3 = vadd.f32 %v1690_v58, %v1597_v4  ;;  %v1704_v6 = vadd.f32 %v1703_v17, %v1598_v13 }
 0x707   :  { %v1707_v8 = vmax.f32 %v1691_v3, 0.0  ;;  %v1708_v53 = vmax.f32 %v1704_v6, 0.0 }
 0x709   :  { %v1709_v57 = vpack.c.bf16 %v1707_v8, %v1707_v8  ;;  %v1710_v1 = vpack.c.bf16 %v1708_v53, %v1708_v53 }
 0x70b   :  { %1851 = vmatmul.bf16.vlgmr.msrb.gmra.mxu2 %v1709_v57  ;;  %1864 = vmatmul.bf16.vlgmr.msra.gmra.mxu3 %v1710_v1 }
 0x70c   :  { %v1692_v22 = vpop.f32.mrf.mxu0  ;;  %v1705_v35 = vpop.f32.mrf.mxu1 }
 0x78e   :  { %v1852_v54 = vpop.f32.mrf.mxu2  ;;  %v1865_v28 = vpop.f32.mrf.mxu3 }
 0x78f   :  { %v1853_v52 = vadd.f32 %v2434_v61, %v1852_v54 }
 0x791   :  { %v1866_v50 = vadd.f32 %v1865_v28, %v1853_v52 }
 0x793   :  { %1869 = vst [vmem:[#allocation18] sm:$0xff] %v1866_v50 }
 0x794   :  { %1880 = dma.vmem_to_hbm [thread:$0]  %s1876_s27, 128, %s1878_s29, [#allocation5]  }
 0x796   :  { %v1854_v27 = vpop.f32.mrf.mxu2  ;;  %v1867_v60 = vpop.f32.mrf.mxu3 }
 0x797   :  { %2766 = dma.done.wait [#allocation5], 128  }
 0x798   :  { %2767 = vsyncadd [#allocation5], 4294967168 }
 0x799   :  { %1885 = vsyncpa [#allocation4], 1 }
 0x79a   :  { %1886 = vsyncpa [#allocation7], 1 }
 0x79b   :  { %1887 = vsyncpa [#allocation10], 1 }
 0x79c   :  { %1888 = vsyncpa [#allocation13], 1 }
 0x79d   :  { %1889 = vsyncpa [#allocation16], 1 }
 0x79e   :  { %1890 = vsyncpa [#allocation5], 1 }

</bundles_post_ra>
